<compile_context>
chip_gen: v5e
topology: v5e:2x2
jax: 0.10.0
libtpu: 0.0.40
codegen_flags: <defaults>
</compile_context>

<pallas_src>
import jax
import jax.numpy as jnp
from jax.experimental import pallas as pl
from jax.experimental.pallas import tpu as pltpu

C_IN = 72
C_OUT = 24
EPS = 1e-5

# Whole-activation-in-VMEM fast path budget: worst-case live f32 temporaries
# are ~(4*C_IN + 3*C_OUT)*4 B/pixel plus the (possibly double-buffered) input
# and output blocks (~1.8 KB/pixel total), so 12288 pixels stays comfortably
# under a 32 MiB scoped-VMEM limit on every TPU generation (v5e/v6e/v7x).
FUSED_MAX_PIXELS = 12288
VMEM_LIMIT_BYTES = 32 * 1024 * 1024


# ----------------------------- fused fast path --------------------------------
def _fused_kernel(x_ref, w_ref, g1_ref, b1_ref, g2_ref, b2_ref, o_ref):
    n_im, _, hw = x_ref.shape
    inv_r = 1.0 / float(n_im * hw)

    x = x_ref[...].astype(jnp.float32)                       # (N, C_IN, HW)

    # BN1 batch stats (two-pass form; everything is VMEM-resident so it's cheap
    # and more accurate than E[x^2]-E[x]^2).
    mean1 = jnp.sum(jnp.sum(x, axis=2, keepdims=True),
                    axis=0, keepdims=True) * inv_r            # (1, C_IN, 1)
    d1 = x - mean1
    var1 = jnp.sum(jnp.sum(d1 * d1, axis=2, keepdims=True),
                   axis=0, keepdims=True) * inv_r
    scale1 = g1_ref[...] * jax.lax.rsqrt(var1 + EPS)          # (1, C_IN, 1)
    h = jnp.maximum(d1 * scale1 + b1_ref[...], 0.0)           # BN1 + ReLU

    # 1x1 conv == per-image (C_OUT, C_IN) @ (C_IN, HW) batched matmul on MXU.
    wb = jnp.broadcast_to(w_ref[...][None], (n_im, C_OUT, C_IN))
    y = jax.lax.dot_general(
        wb, h, dimension_numbers=(((2,), (1,)), ((0,), (0,))),
        preferred_element_type=jnp.float32)                   # (N, C_OUT, HW)

    # BN2 (same two-pass form), applied in place on the VMEM-resident y.
    mean2 = jnp.sum(jnp.sum(y, axis=2, keepdims=True),
                    axis=0, keepdims=True) * inv_r
    d2 = y - mean2
    var2 = jnp.sum(jnp.sum(d2 * d2, axis=2, keepdims=True),
                   axis=0, keepdims=True) * inv_r
    scale2 = g2_ref[...] * jax.lax.rsqrt(var2 + EPS)
    o_ref[...] = (d2 * scale2 + b2_ref[...]).astype(o_ref.dtype)


# ----------------------------- tiled 3-pass path ------------------------------
def _pick_hw_tile(hw_pad):
    """Largest lane-dense tile (multiple of 128) that divides the padded H*W."""
    for t in (8192, 4096, 2048, 1024, 512, 256, 128):
        if hw_pad % t == 0:
            return t
    return 128  # unreachable: hw_pad is always a multiple of 128


def _bn1_stats_kernel(x_ref, s_ref, ss_ref):
    # x_ref: (C_IN, hw_t); s_ref/ss_ref: (C_IN, 1) accumulators resident across
    # the hw-tile (reduction) grid axis.
    @pl.when(pl.program_id(2) == 0)
    def _():
        s_ref[...] = jnp.zeros_like(s_ref)
        ss_ref[...] = jnp.zeros_like(ss_ref)

    x = x_ref[...].astype(jnp.float32)
    s_ref[...] += jnp.sum(x, axis=-1, keepdims=True)
    ss_ref[...] += jnp.sum(x * x, axis=-1, keepdims=True)


def _bn1_relu_conv_kernel(x_ref, w_ref, sc1_ref, sh1_ref, y_ref, s_ref, ss_ref):
    @pl.when(pl.program_id(2) == 0)
    def _():
        s_ref[...] = jnp.zeros_like(s_ref)
        ss_ref[...] = jnp.zeros_like(ss_ref)

    x = x_ref[...].astype(jnp.float32)                        # (C_IN, hw_t)
    h = jnp.maximum(x * sc1_ref[...] + sh1_ref[...], 0.0)     # BN1 + ReLU
    y = jnp.dot(w_ref[...], h, preferred_element_type=jnp.float32)  # MXU
    y_ref[...] = y.astype(y_ref.dtype)
    # BN2 batch statistics accumulated on the fly (no extra HBM pass over y).
    s_ref[...] += jnp.sum(y, axis=-1, keepdims=True)
    ss_ref[...] += jnp.sum(y * y, axis=-1, keepdims=True)


def _bn2_apply_kernel(y_ref, sc2_ref, sh2_ref, o_ref):
    y = y_ref[...].astype(jnp.float32)
    o_ref[...] = (y * sc2_ref[...] + sh2_ref[...]).astype(o_ref.dtype)


# ---------------------------------- wrapper -----------------------------------
@jax.jit
def fused_forward(x_nchw, w_conv, g1, b1, g2, b2):
    """x_nchw: (N, 72, H, W); w_conv: (24, 72, 1, 1). Returns (N, 24, H, W)."""
    N, C, H, W = x_nchw.shape
    assert C == C_IN
    HW = H * W
    R = N * HW

    # Free reshapes only -- no NCHW<->NHWC transposes, no HBM relayout traffic.
    x = x_nchw.reshape(N, C_IN, HW)
    w_mat = w_conv.reshape(C_OUT, C_IN).astype(jnp.float32)   # (24, 72)
    g1f = g1.astype(jnp.float32).reshape(C_IN, 1)
    b1f = b1.astype(jnp.float32).reshape(C_IN, 1)
    g2f = g2.astype(jnp.float32).reshape(C_OUT, 1)
    b2f = b2.astype(jnp.float32).reshape(C_OUT, 1)

    # ---------------- fast path: everything in VMEM, one launch ----------------
    if R <= FUSED_MAX_PIXELS:
        out = pl.pallas_call(
            _fused_kernel,
            grid=(1,),
            in_specs=[pl.BlockSpec((N, C_IN, HW), lambda i: (0, 0, 0)),
                      pl.BlockSpec((C_OUT, C_IN), lambda i: (0, 0)),
                      pl.BlockSpec((C_IN, 1), lambda i: (0, 0)),
                      pl.BlockSpec((C_IN, 1), lambda i: (0, 0)),
                      pl.BlockSpec((C_OUT, 1), lambda i: (0, 0)),
                      pl.BlockSpec((C_OUT, 1), lambda i: (0, 0))],
            out_specs=pl.BlockSpec((N, C_OUT, HW), lambda i: (0, 0, 0)),
            out_shape=jax.ShapeDtypeStruct((N, C_OUT, HW), x.dtype),
            compiler_params=pltpu.CompilerParams(
                dimension_semantics=("arbitrary",),
                vmem_limit_bytes=VMEM_LIMIT_BYTES),
        )(x, w_mat, g1f, b1f, g2f, b2f)
        return out.reshape(N, C_OUT, H, W)

    # ---------------- tiled path: 3 HBM sweeps with big lane-dense tiles -------
    HW_pad = ((HW + 127) // 128) * 128
    pad = HW_pad - HW
    if pad:
        x = jnp.pad(x, ((0, 0), (0, 0), (0, pad)))            # zero padding
    hw_t = _pick_hw_tile(HW_pad)
    n_hw = HW_pad // hw_t
    # Extra parallel chunk axis so both TensorCores on v7x are used when N == 1.
    nchunk = 2 if n_hw % 2 == 0 else 1
    t_per = n_hw // nchunk
    grid = (N, nchunk, t_per)

    x_spec = pl.BlockSpec((None, C_IN, hw_t),
                          lambda n, c, t: (n, 0, c * t_per + t))
    y_spec = pl.BlockSpec((None, C_OUT, hw_t),
                          lambda n, c, t: (n, 0, c * t_per + t))
    vec_spec = lambda ch: pl.BlockSpec((ch, 1), lambda n, c, t: (0, 0))
    stat_spec = lambda ch: pl.BlockSpec((None, None, ch, 1),
                                        lambda n, c, t: (n, c, 0, 0))
    cparams = pltpu.CompilerParams(
        dimension_semantics=("parallel", "parallel", "arbitrary"),
        vmem_limit_bytes=VMEM_LIMIT_BYTES)

    # ---- pass 1: BN1 batch statistics (per image x chunk partials) ----
    sx, sxx = pl.pallas_call(
        _bn1_stats_kernel,
        grid=grid,
        in_specs=[x_spec],
        out_specs=(stat_spec(C_IN), stat_spec(C_IN)),
        out_shape=(jax.ShapeDtypeStruct((N, nchunk, C_IN, 1), jnp.float32),
                   jax.ShapeDtypeStruct((N, nchunk, C_IN, 1), jnp.float32)),
        compiler_params=cparams,
    )(x)
    sx = jnp.sum(sx, axis=(0, 1))[:, 0]
    sxx = jnp.sum(sxx, axis=(0, 1))[:, 0]
    mean1 = sx / R
    var1 = jnp.maximum(sxx / R - mean1 * mean1, 0.0)          # biased (train BN)
    scale1 = g1.astype(jnp.float32) * jax.lax.rsqrt(var1 + EPS)
    shift1 = b1.astype(jnp.float32) - mean1 * scale1

    # ---- pass 2: BN1 apply + ReLU + 1x1 conv, plus BN2 batch statistics ----
    y, sy, syy = pl.pallas_call(
        _bn1_relu_conv_kernel,
        grid=grid,
        in_specs=[x_spec,
                  pl.BlockSpec((C_OUT, C_IN), lambda n, c, t: (0, 0)),
                  vec_spec(C_IN), vec_spec(C_IN)],
        out_specs=(y_spec, stat_spec(C_OUT), stat_spec(C_OUT)),
        out_shape=(jax.ShapeDtypeStruct((N, C_OUT, HW_pad), x.dtype),
                   jax.ShapeDtypeStruct((N, nchunk, C_OUT, 1), jnp.float32),
                   jax.ShapeDtypeStruct((N, nchunk, C_OUT, 1), jnp.float32)),
        compiler_params=cparams,
    )(x, w_mat, scale1.reshape(C_IN, 1), shift1.reshape(C_IN, 1))

    sy = jnp.sum(sy, axis=(0, 1))[:, 0]
    syy = jnp.sum(syy, axis=(0, 1))[:, 0]
    if pad:
        # Padded pixels are zeros -> after BN1+ReLU+conv they are the constant
        # per-channel vector y_pad; remove their contribution analytically.
        y_pad = w_mat @ jnp.maximum(shift1, 0.0)               # (C_OUT,)
        sy = sy - (N * pad) * y_pad
        syy = syy - (N * pad) * (y_pad * y_pad)
    mean2 = sy / R
    var2 = jnp.maximum(syy / R - mean2 * mean2, 0.0)
    scale2 = g2.astype(jnp.float32) * jax.lax.rsqrt(var2 + EPS)
    shift2 = b2.astype(jnp.float32) - mean2 * scale2

    # ---- pass 3: BN2 apply, in place on y via input/output aliasing ----
    out = pl.pallas_call(
        _bn2_apply_kernel,
        grid=(N, n_hw),
        in_specs=[pl.BlockSpec((None, C_OUT, hw_t), lambda n, t: (n, 0, t)),
                  pl.BlockSpec((C_OUT, 1), lambda n, t: (0, 0)),
                  pl.BlockSpec((C_OUT, 1), lambda n, t: (0, 0))],
        out_specs=pl.BlockSpec((None, C_OUT, hw_t), lambda n, t: (n, 0, t)),
        out_shape=jax.ShapeDtypeStruct((N, C_OUT, HW_pad), x.dtype),
        input_output_aliases={0: 0},
        compiler_params=pltpu.CompilerParams(
            dimension_semantics=("parallel", "parallel"),
            vmem_limit_bytes=VMEM_LIMIT_BYTES),
    )(y, scale2.reshape(C_OUT, 1), shift2.reshape(C_OUT, 1))

    if pad:
        out = out[:, :, :HW]
    return out.reshape(N, C_OUT, H, W)


# ---------------------------------- reference ----------------------------------
@jax.jit
def reference_forward(x, w_conv, g1, b1, g2, b2):
    """Pure-JAX reference (training-mode BN) for the correctness check."""
    def bn(v, g, b):
        mean = jnp.mean(v, axis=(0, 2, 3), keepdims=True)
        var = jnp.mean((v - mean) ** 2, axis=(0, 2, 3), keepdims=True)
        return (v - mean) * jax.lax.rsqrt(var + EPS) * g.reshape(1, -1, 1, 1) \
            + b.reshape(1, -1, 1, 1)

    h = jnp.maximum(bn(x, g1, b1), 0.0)
    y = jax.lax.conv_general_dilated(
        h, w_conv, window_strides=(1, 1), padding="VALID",
        dimension_numbers=("NCHW", "OIHW", "NCHW"))
    return bn(y, g2, b2)


if __name__ == "__main__":
    key = jax.random.PRNGKey(0)
    kx1, kx2, kx3, kx4, kw, k1, k2, k3, k4 = jax.random.split(key, 9)

    # Deterministic synthetic parameters (channels fixed by the module: 72->24).
    w_conv = jax.random.normal(kw, (C_OUT, C_IN, 1, 1), dtype=jnp.float32) * 0.1
    gamma1 = 1.0 + 0.1 * jax.random.normal(k1, (C_IN,), dtype=jnp.float32)
    beta1 = 0.1 * jax.random.normal(k2, (C_IN,), dtype=jnp.float32)
    gamma2 = 1.0 + 0.1 * jax.random.normal(k3, (C_OUT,), dtype=jnp.float32)
    beta2 = 0.1 * jax.random.normal(k4, (C_OUT,), dtype=jnp.float32)

    def check(x):
        out = jax.block_until_ready(
            fused_forward(x, w_conv, gamma1, beta1, gamma2, beta2))
        ref = reference_forward(x, w_conv, gamma1, beta1, gamma2, beta2)
        assert out.shape == ref.shape
        assert jnp.allclose(out, ref, atol=2e-4, rtol=2e-4), \
            float(jnp.max(jnp.abs(out - ref)))

    # Spec shape (1, 72, 28, 28): single fused whole-activation-in-VMEM kernel.
    check(jax.random.normal(kx1, (1, C_IN, 28, 28), dtype=jnp.float32))
    # Fused fast path with batch > 1 (batched MXU matmul).
    check(jax.random.normal(kx2, (2, C_IN, 64, 64), dtype=jnp.float32))
    # Tiled 3-pass path, 128-divisible H*W, chunked parallel axis.
    check(jax.random.normal(kx3, (2, C_IN, 128, 128), dtype=jnp.float32))
    # Tiled path with ragged H*W (zero pad + analytic BN2-stat correction).
    check(jax.random.normal(kx4, (2, C_IN, 115, 115), dtype=jnp.float32))

    print("KERNEL_OK")
</pallas_src>

<mosaic_0001>
module attributes {stable_mosaic.version = 11 : i64} {
  func.func @_fused_kernel(%arg0: i32, %arg1: memref<1x72x784xf32, #tpu.memory_space<vmem>>, %arg2: memref<24x72xf32, #tpu.memory_space<vmem>>, %arg3: memref<72x1xf32, #tpu.memory_space<vmem>>, %arg4: memref<72x1xf32, #tpu.memory_space<vmem>>, %arg5: memref<24x1xf32, #tpu.memory_space<vmem>>, %arg6: memref<24x1xf32, #tpu.memory_space<vmem>>, %arg7: memref<1x24x784xf32, #tpu.memory_space<vmem>>) attributes {dimension_semantics = [#tpu.dimension_semantics<arbitrary>], iteration_bounds = array<i64: 1>, scalar_prefetch = 0 : i64, scratch_operands = 0 : i64, tpu.core_type = #tpu.core_type<tc>, window_params = [{pipeline_mode = #tpu.pipeline_mode<synchronous>, transform_indices = @transform_0, window_bounds = array<i64: 1, 72, 784>}, {pipeline_mode = #tpu.pipeline_mode<synchronous>, transform_indices = @transform_1, window_bounds = array<i64: 24, 72>}, {pipeline_mode = #tpu.pipeline_mode<synchronous>, transform_indices = @transform_2, window_bounds = array<i64: 72, 1>}, {pipeline_mode = #tpu.pipeline_mode<synchronous>, transform_indices = @transform_3, window_bounds = array<i64: 72, 1>}, {pipeline_mode = #tpu.pipeline_mode<synchronous>, transform_indices = @transform_4, window_bounds = array<i64: 24, 1>}, {pipeline_mode = #tpu.pipeline_mode<synchronous>, transform_indices = @transform_5, window_bounds = array<i64: 24, 1>}, {pipeline_mode = #tpu.pipeline_mode<synchronous>, transform_indices = @transform_6, window_bounds = array<i64: 1, 24, 784>}]} {
    %c0 = arith.constant 0 : index
    %c0_0 = arith.constant 0 : index
    %c0_1 = arith.constant 0 : index
    %0 = vector.load %arg1[%c0, %c0_0, %c0_1] : memref<1x72x784xf32, #tpu.memory_space<vmem>>, vector<1x72x784xf32>
    %cst = arith.constant dense<0.000000e+00> : vector<1x72xf32>
    %1 = vector.multi_reduction <add>, %0, %cst [2] : vector<1x72x784xf32> to vector<1x72xf32>
    %2 = vector.shape_cast %1 : vector<1x72xf32> to vector<1x72x1xf32>
    %cst_2 = arith.constant dense<0.000000e+00> : vector<72x1xf32>
    %3 = vector.multi_reduction <add>, %2, %cst_2 [0] : vector<1x72x1xf32> to vector<72x1xf32>
    %4 = vector.shape_cast %3 : vector<72x1xf32> to vector<1x72x1xf32>
    %cst_3 = arith.constant 0.00127551018 : f32
    %5 = vector.broadcast %cst_3 : f32 to vector<1x72x1xf32>
    %6 = arith.mulf %4, %5 : vector<1x72x1xf32>
    %7 = vector.broadcast %6 : vector<1x72x1xf32> to vector<1x72x784xf32>
    %8 = arith.subf %0, %7 : vector<1x72x784xf32>
    %9 = arith.mulf %8, %8 : vector<1x72x784xf32>
    %cst_4 = arith.constant dense<0.000000e+00> : vector<1x72xf32>
    %10 = vector.multi_reduction <add>, %9, %cst_4 [2] : vector<1x72x784xf32> to vector<1x72xf32>
    %11 = vector.shape_cast %10 : vector<1x72xf32> to vector<1x72x1xf32>
    %cst_5 = arith.constant dense<0.000000e+00> : vector<72x1xf32>
    %12 = vector.multi_reduction <add>, %11, %cst_5 [0] : vector<1x72x1xf32> to vector<72x1xf32>
    %13 = vector.shape_cast %12 : vector<72x1xf32> to vector<1x72x1xf32>
    %cst_6 = arith.constant 0.00127551018 : f32
    %14 = vector.broadcast %cst_6 : f32 to vector<1x72x1xf32>
    %15 = arith.mulf %13, %14 : vector<1x72x1xf32>
    %c0_7 = arith.constant 0 : index
    %c0_8 = arith.constant 0 : index
    %16 = vector.load %arg3[%c0_7, %c0_8] : memref<72x1xf32, #tpu.memory_space<vmem>>, vector<72x1xf32>
    %cst_9 = arith.constant 9.99999974E-6 : f32
    %17 = vector.broadcast %cst_9 : f32 to vector<1x72x1xf32>
    %18 = arith.addf %15, %17 : vector<1x72x1xf32>
    %19 = math.rsqrt %18 : vector<1x72x1xf32>
    %20 = vector.shape_cast %16 : vector<72x1xf32> to vector<1x72x1xf32>
    %21 = arith.mulf %20, %19 : vector<1x72x1xf32>
    %22 = vector.broadcast %21 : vector<1x72x1xf32> to vector<1x72x784xf32>
    %23 = arith.mulf %8, %22 : vector<1x72x784xf32>
    %c0_10 = arith.constant 0 : index
    %c0_11 = arith.constant 0 : index
    %24 = vector.load %arg4[%c0_10, %c0_11] : memref<72x1xf32, #tpu.memory_space<vmem>>, vector<72x1xf32>
    %25 = vector.shape_cast %24 : vector<72x1xf32> to vector<1x72x1xf32>
    %26 = vector.broadcast %25 : vector<1x72x1xf32> to vector<1x72x784xf32>
    %27 = arith.addf %23, %26 : vector<1x72x784xf32>
    %cst_12 = arith.constant 0.000000e+00 : f32
    %28 = vector.broadcast %cst_12 : f32 to vector<1x72x784xf32>
    %29 = arith.maximumf %27, %28 : vector<1x72x784xf32>
    %c0_13 = arith.constant 0 : index
    %c0_14 = arith.constant 0 : index
    %30 = vector.load %arg2[%c0_13, %c0_14] : memref<24x72xf32, #tpu.memory_space<vmem>>, vector<24x72xf32>
    %31 = vector.shape_cast %30 : vector<24x72xf32> to vector<1x24x72xf32>
    %cst_15 = arith.constant dense<0.000000e+00> : vector<1x24x784xf32>
    %32 = tpu.matmul %31, %29, %cst_15 {dimension_numbers = #tpu.dot_dimension_numbers<[2], [1], [1], [2], [0, 0, 0, 1, 1, 2], [0], [0]>} : vector<1x24x72xf32>, vector<1x72x784xf32>, vector<1x24x784xf32> -> vector<1x24x784xf32>
    %cst_16 = arith.constant dense<0.000000e+00> : vector<1x24xf32>
    %33 = vector.multi_reduction <add>, %32, %cst_16 [2] : vector<1x24x784xf32> to vector<1x24xf32>
    %34 = vector.shape_cast %33 : vector<1x24xf32> to vector<1x24x1xf32>
    %cst_17 = arith.constant dense<0.000000e+00> : vector<24x1xf32>
    %35 = vector.multi_reduction <add>, %34, %cst_17 [0] : vector<1x24x1xf32> to vector<24x1xf32>
    %36 = vector.shape_cast %35 : vector<24x1xf32> to vector<1x24x1xf32>
    %cst_18 = arith.constant 0.00127551018 : f32
    %37 = vector.broadcast %cst_18 : f32 to vector<1x24x1xf32>
    %38 = arith.mulf %36, %37 : vector<1x24x1xf32>
    %39 = vector.broadcast %38 : vector<1x24x1xf32> to vector<1x24x784xf32>
    %40 = arith.subf %32, %39 : vector<1x24x784xf32>
    %41 = arith.mulf %40, %40 : vector<1x24x784xf32>
    %cst_19 = arith.constant dense<0.000000e+00> : vector<1x24xf32>
    %42 = vector.multi_reduction <add>, %41, %cst_19 [2] : vector<1x24x784xf32> to vector<1x24xf32>
    %43 = vector.shape_cast %42 : vector<1x24xf32> to vector<1x24x1xf32>
    %cst_20 = arith.constant dense<0.000000e+00> : vector<24x1xf32>
    %44 = vector.multi_reduction <add>, %43, %cst_20 [0] : vector<1x24x1xf32> to vector<24x1xf32>
    %45 = vector.shape_cast %44 : vector<24x1xf32> to vector<1x24x1xf32>
    %cst_21 = arith.constant 0.00127551018 : f32
    %46 = vector.broadcast %cst_21 : f32 to vector<1x24x1xf32>
    %47 = arith.mulf %45, %46 : vector<1x24x1xf32>
    %c0_22 = arith.constant 0 : index
    %c0_23 = arith.constant 0 : index
    %48 = vector.load %arg5[%c0_22, %c0_23] : memref<24x1xf32, #tpu.memory_space<vmem>>, vector<24x1xf32>
    %cst_24 = arith.constant 9.99999974E-6 : f32
    %49 = vector.broadcast %cst_24 : f32 to vector<1x24x1xf32>
    %50 = arith.addf %47, %49 : vector<1x24x1xf32>
    %51 = math.rsqrt %50 : vector<1x24x1xf32>
    %52 = vector.shape_cast %48 : vector<24x1xf32> to vector<1x24x1xf32>
    %53 = arith.mulf %52, %51 : vector<1x24x1xf32>
    %54 = vector.broadcast %53 : vector<1x24x1xf32> to vector<1x24x784xf32>
    %55 = arith.mulf %40, %54 : vector<1x24x784xf32>
    %c0_25 = arith.constant 0 : index
    %c0_26 = arith.constant 0 : index
    %56 = vector.load %arg6[%c0_25, %c0_26] : memref<24x1xf32, #tpu.memory_space<vmem>>, vector<24x1xf32>
    %57 = vector.shape_cast %56 : vector<24x1xf32> to vector<1x24x1xf32>
    %58 = vector.broadcast %57 : vector<1x24x1xf32> to vector<1x24x784xf32>
    %59 = arith.addf %55, %58 : vector<1x24x784xf32>
    %c0_27 = arith.constant 0 : index
    %c0_28 = arith.constant 0 : index
    %c0_29 = arith.constant 0 : index
    %60 = vector.load %arg7[%c0_27, %c0_28, %c0_29] : memref<1x24x784xf32, #tpu.memory_space<vmem>>, vector<1x24x784xf32>
    tpu.vector_store %arg7[%c0_27, %c0_28, %c0_29], %59 {strides = array<i32>} : memref<1x24x784xf32, #tpu.memory_space<vmem>>, vector<1x24x784xf32>,
    return
  }
  func.func @transform_0(%arg0: i32) -> (i32, i32, i32) {
    %c0_i32 = arith.constant 0 : i32
    %c0_i32_0 = arith.constant 0 : i32
    %c0_i32_1 = arith.constant 0 : i32
    %c0_i32_2 = arith.constant 0 : i32
    return %c0_i32, %c0_i32_0, %c0_i32_1 : i32, i32, i32
  }
  func.func @transform_1(%arg0: i32) -> (i32, i32) {
    %c0_i32 = arith.constant 0 : i32
    %c0_i32_0 = arith.constant 0 : i32
    %c0_i32_1 = arith.constant 0 : i32
    return %c0_i32, %c0_i32_0 : i32, i32
  }
  func.func @transform_2(%arg0: i32) -> (i32, i32) {
    %c0_i32 = arith.constant 0 : i32
    %c0_i32_0 = arith.constant 0 : i32
    %c0_i32_1 = arith.constant 0 : i32
    return %c0_i32, %c0_i32_0 : i32, i32
  }
  func.func @transform_3(%arg0: i32) -> (i32, i32) {
    %c0_i32 = arith.constant 0 : i32
    %c0_i32_0 = arith.constant 0 : i32
    %c0_i32_1 = arith.constant 0 : i32
    return %c0_i32, %c0_i32_0 : i32, i32
  }
  func.func @transform_4(%arg0: i32) -> (i32, i32) {
    %c0_i32 = arith.constant 0 : i32
    %c0_i32_0 = arith.constant 0 : i32
    %c0_i32_1 = arith.constant 0 : i32
    return %c0_i32, %c0_i32_0 : i32, i32
  }
  func.func @transform_5(%arg0: i32) -> (i32, i32) {
    %c0_i32 = arith.constant 0 : i32
    %c0_i32_0 = arith.constant 0 : i32
    %c0_i32_1 = arith.constant 0 : i32
    return %c0_i32, %c0_i32_0 : i32, i32
  }
  func.func @transform_6(%arg0: i32) -> (i32, i32, i32) {
    %c0_i32 = arith.constant 0 : i32
    %c0_i32_0 = arith.constant 0 : i32
    %c0_i32_1 = arith.constant 0 : i32
    %c0_i32_2 = arith.constant 0 : i32
    return %c0_i32, %c0_i32_0, %c0_i32_1 : i32, i32, i32
  }
}

</mosaic_0001>

<bundles_post_ra>
// kernel: fused_forward.1
= control target key start
LH: loop header
LB: loop body
LE: loop exit
PB: predicated region body
PF: predicated region fallthrough
CT: control target
= control target key end

     0   :  { %v1316_v11 = vmov 0   ;;  %vm91_vm0 = vcmask 130048   ;;  %s2631_s0 = inlined_call_operand.vmem [shape: f32[1,72,784], index: 0, kind: input, shape index: {}]   ;;  %s2632_s3 = inlined_call_operand.vmem [shape: f32[72,1], index: 3, kind: input, shape index: {}]   ;;  %s2633_s2 = inlined_call_operand.vmem [shape: f32[72,1], index: 2, kind: input, shape index: {}]   ;;  %s2634_s1 = inlined_call_operand.vmem [shape: f32[24,72], index: 1, kind: input, shape index: {}]   ;;  %s2635_s4 = inlined_call_operand.vmem [shape: f32[24,1], index: 4, kind: input, shape index: {}]   ;;  %s2636_s5 = inlined_call_operand.vmem [shape: f32[24,1], index: 5, kind: input, shape index: {}]   ;;  %s2637_s6 = inlined_call_operand.vmem [shape: f32[1,24,784], index: 6, kind: output, shape index: {}]  }
   0x1   :  { %v1355_v0 = vld [vmem:[%s2631_s0 + $0x1c0] sm:$0xff]  ;;  %v1360_v1 = vld [vmem:[%s2631_s0 + $0x1c8] sm:$0xff]  ;;  %v1365_v2 = vld [vmem:[%s2631_s0 + $0x1d0] sm:$0xff]  ;;  %1290 = vset.pattern.permute.xlu1 %v1316_v11  ;;  %1289 = vset.pattern.permute.xlu2 %v1316_v11 }
   0x2   :  { %v159_v3 = vadd.f32 %v1360_v1, %v1355_v0  ;;  %v1372_v4 = vld [vmem:[%s2631_s0 + $0x1d8] sm:$0xff]  ;;  %v1377_v5 = vld [vmem:[%s2631_s0 + $0x150] sm:$0xff]  ;;  %v1387_v7 = vld [vmem:[%s2631_s0 + $0x1e0] sm:$0xff]  ;;  %1291 = vset.pattern.permute.xlu0 %v1316_v11 }
   0x3   :  { %v1382_v6 = vld [vmem:[%s2631_s0 + $0x158] sm:$0xff]  ;;  %v1393_v9 = vld [vmem:[%s2631_s0 + $0x160] sm:$0xff]  ;;  %v1400_v12 = vld [vmem:[%s2631_s0 + $0x1e8] sm:$0xff] }
   0x4   :  { %v160_v8 = vadd.f32 %v159_v3, %v1365_v2  ;;  %v141_v10 = vadd.f32 %v1382_v6, %v1377_v5  ;;  %v1405_v13 = vld [vmem:[%s2631_s0 + $0x168] sm:$0xff]  ;;  %v1410_v14 = vld [vmem:[%s2631_s0 + $0xe0] sm:$0xff]  ;;  %v1415_v15 = vld [vmem:[%s2631_s0 + $0x1f0] sm:$0xff] }
   0x5   :  { %v1422_v18 = vld [vmem:[%s2631_s0 + $0xe8] sm:$0xff]  ;;  %v1427_v19 = vld [vmem:[%s2631_s0 + $0xf0] sm:$0xff]  ;;  %v1437_v21 = vld [vmem:[%s2631_s0 + $0x180] sm:$0xff]  ;;  %v164_v29 = vsel %vm91_vm0, %v1415_v15, 0.0 }
   0x6   :  { %v161_v16 = vadd.f32 %v160_v8, %v1372_v4  ;;  %v142_v17 = vadd.f32 %v141_v10, %v1393_v9  ;;  %v1432_v20 = vld [vmem:[%s2631_s0 + $0x170] sm:$0xff]  ;;  %v1442_v22 = vld [vmem:[%s2631_s0 + $0xf8] sm:$0xff]  ;;  %v123_v23 = vadd.f32 %v1422_v18, %v1410_v14  ;;  %v1451_v26 = vld [vmem:[%s2631_s0 + $0x188] sm:$0xff]  ;;  %v146_v40 = vsel %vm91_vm0, %v1437_v21, 0.0 }
   0x7   :  { %2678 = vst [vmem:[#allocation2_spill] sm:$0xff] %v1442_v22  ;;  %v1456_v27 = vld [vmem:[%s2631_s0 + $0x190] sm:$0xff]  ;;  %v1461_v28 = vld [vmem:[%s2631_s0 + $0x198] sm:$0xff]  ;;  %v1473_v31 = vld [vmem:[%s2631_s0 + $0x100] sm:$0xff] }
   0x8   :  { %v162_v24 = vadd.f32 %v161_v16, %v1387_v7  ;;  %v143_v25 = vadd.f32 %v142_v17, %v1405_v13  ;;  %v1468_v30 = vld [vmem:[%s2631_s0 + $0x178] sm:$0xff]  ;;  %2679 = vst [vmem:[#allocation3_spill] sm:$0xff] %v1473_v31  ;;  %v124_v32 = vadd.f32 %v123_v23, %v1427_v19  ;;  %v150_v33 = vadd.f32 %v1456_v27, %v1451_v26  ;;  %v1483_v36 = vld [vmem:[%s2631_s0 + $0x108] sm:$0xff]  ;;  %v1488_v37 = vld [vmem:[%s2631_s0 + $0x1a0] sm:$0xff] }
   0x9   :  { %2680 = vst [vmem:[#allocation4_spill] sm:$0xff] %v1483_v36  ;;  %v1493_v38 = vld [vmem:[%s2631_s0 + $0x118] sm:$0xff]  ;;  %v1498_v39 = vld [vmem:[%s2631_s0 + $0x120] sm:$0xff]  ;;  %v1505_v41 = vld [vmem:[%s2631_s0 + $0x110] sm:$0xff] }
   0xa   :  { %v163_v34 = vadd.f32 %v162_v24, %v1400_v12  ;;  %v144_v35 = vadd.f32 %v143_v25, %v1432_v20  ;;  %2681 = vst [vmem:[#allocation5_spill] sm:$0xff] %v1505_v41  ;;  %v125_v42 = vadd.f32 %v124_v32, %v1442_v22  ;;  %v1511_v43 = vld [vmem:[%s2631_s0 + $0x1a8] sm:$0xff]  ;;  %v151_v44 = vadd.f32 %v150_v33, %v1461_v28  ;;  %v1525_v49 = vld [vmem:[%s2631_s0 + $0x1b0] sm:$0xff]  ;;  %v1541_v53 = vld [vmem:[%s2631_s0 + $0x1b8] sm:$0xff] }
   0xb   :  { %v1517_v45 = vld [vmem:[%s2631_s0 + $0x128] sm:$0xff]  ;;  %v132_v46 = vadd.f32 %v1498_v39, %v1493_v38  ;;  %v1530_v50 = vld [vmem:[%s2631_s0 + $0x130] sm:$0xff]  ;;  %v1553_v57 = vld [vmem:[%s2631_s0 + $0xb8] sm:$0xff]  ;;  %v128_v59 = vsel %vm91_vm0, %v1505_v41, 0.0  ;;  %v155_v23 = vsel %vm91_vm0, %v1541_v53, 0.0 }
   0xc   :  { %v165_v47 = vadd.f32 %v164_v29, %v163_v34  ;;  %v145_v48 = vadd.f32 %v144_v35, %v1468_v30  ;;  %v1535_v51 = vld [vmem:[%s2631_s0 + $0xa8] sm:$0xff]  ;;  %v126_v52 = vadd.f32 %v125_v42, %v1473_v31  ;;  %v152_v54 = vadd.f32 %v151_v44, %v1488_v37  ;;  %v1548_v56 = vld [vmem:[%s2631_s0 + $0xb0] sm:$0xff]  ;;  %v1560_v60 = vld [vmem:[%s2631_s0 + $0x138] sm:$0xff] }
   0xd   :  { %v133_v55 = vadd.f32 %v132_v46, %v1517_v45  ;;  %v1565_v61 = vld [vmem:[%s2631_s0 + $0x148] sm:$0xff]  ;;  %v1570_v62 = vld [vmem:[%s2631_s0 + $0xc0] sm:$0xff]  ;;  %v114_v63 = vadd.f32 %v1548_v56, %v1535_v51  ;;  %v1580_v11 = vld [vmem:[%s2631_s0 + $0x70] sm:$0xff] }
   0xe   :  { %166 = vadd.xlane.f32.xlu0 %v165_v47  ;;  %v147_v58 = vadd.f32 %v146_v40, %v145_v48  ;;  %v127_v3 = vadd.f32 %v126_v52, %v1483_v36  ;;  %v153_v8 = vadd.f32 %v152_v54, %v1511_v43  ;;  %v1585_v16 = vld [vmem:[%s2631_s0 + $0x78] sm:$0xff]  ;;  %v1590_v17 = vld [vmem:[%s2631_s0 + $0x80] sm:$0xff]  ;;  %v1602_v25 = vld [vmem:[%s2631_s0 + $0xc8] sm:$0xff]  ;;  %v137_v46 = vsel %vm91_vm0, %v1565_v61, 0.0 }
   0xf   :  { %v134_v10 = vadd.f32 %v133_v55, %v1530_v50  ;;  %v1597_v24 = vld [vmem:[%s2631_s0 + $0x140] sm:$0xff]  ;;  %v115_v29 = vadd.f32 %v114_v63, %v1553_v57  ;;  %v105_v32 = vadd.f32 %v1585_v16, %v1580_v11  ;;  %v1612_v40 = vld [vmem:[%s2631_s0 + $0x88] sm:$0xff]  ;;  %v1617_v42 = vld [vmem:[%s2631_s0 + $0x38] sm:$0xff] }
  0x10   :  { %148 = vadd.xlane.f32.xlu1 %v147_v58  ;;  %v129_v33 = vadd.f32 %v128_v59, %v127_v3  ;;  %v154_v34 = vadd.f32 %v153_v8, %v1525_v49  ;;  %2682 = vst [vmem:[#allocation6_spill] sm:$0xff] %v1617_v42  ;;  %v1622_v44 = vld [vmem:[%s2631_s0 + $0x40] sm:$0xff]  ;;  %v1629_v47 = vld [vmem:[%s2631_s0 + $0xd0] sm:$0xff]  ;;  %v1634_v48 = vld [vmem:[%s2631_s0 + $0xd8] sm:$0xff] }
  0x11   :  { %v135_v35 = vadd.f32 %v134_v10, %v1560_v60  ;;  %2683 = vst [vmem:[#allocation7_spill] sm:$0xff] %v1622_v44  ;;  %v116_v52 = vadd.f32 %v115_v29, %v1570_v62  ;;  %v106_v54 = vadd.f32 %v105_v32, %v1590_v17  ;;  %v1641_v55 = vld [vmem:[%s2631_s0 + $0x48] sm:$0xff]  ;;  %v96_v58 = vadd.f32 %v1622_v44, %v1617_v42  ;;  %v1649_v3 = vld [vmem:[%s2631_s0 + $0x90] sm:$0xff]  ;;  %v1659_v10 = vld [vmem:[%s2631_s0] sm:$0xff] }
  0x12   :  { %2684 = vst [vmem:[#allocation8_spill] sm:$0xff] %v1641_v55  ;;  %130 = vadd.xlane.f32.xlu2 %v129_v33  ;;  %v156_v59 = vadd.f32 %v155_v23, %v154_v34  ;;  %v1654_v8 = vld [vmem:[%s2631_s0 + $0x50] sm:$0xff]  ;;  %v1665_v23 = vld [vmem:[%s2631_s0 + $0xa0] sm:$0xff]  ;;  %v1672_v34 = vld [vmem:[%s2631_s0 + $0x8] sm:$0xff]  ;;  %v119_v44 = vsel %vm91_vm0, %v1634_v48, 0.0 }
  0x13   :  { %v136_v63 = vadd.f32 %v135_v35, %v1597_v24  ;;  %2685 = vst [vmem:[#allocation9_spill] sm:$0xff] %v1654_v8  ;;  %v117_v29 = vadd.f32 %v116_v52, %v1602_v25  ;;  %v107_v32 = vadd.f32 %v106_v54, %v1612_v40  ;;  %v97_v33 = vadd.f32 %v96_v58, %v1641_v55  ;;  %v1677_v35 = vld [vmem:[%s2631_s0 + $0x10] sm:$0xff]  ;;  %v1684_v54 = vld [vmem:[%s2631_s0 + $0x98] sm:$0xff] }
  0x14   :  { %2686 = vst [vmem:[#allocation10_spill] sm:$0xff] %v1659_v10  ;;  %v1689_v58 = vld [vmem:[%s2631_s0 + $0x58] sm:$0xff]  ;;  %v86_v55 = vadd.f32 %v1672_v34, %v1659_v10  ;;  %v1726_v22 = vld [vmem:[%s2631_s0 + $0x30] sm:$0xff] }
  0x15   :  { %2687 = vst [vmem:[#allocation11_spill] sm:$0xff] %v1672_v34  ;;  %v138_v52 = vadd.f32 %v137_v46, %v136_v63  ;;  %v118_v42 = vadd.f32 %v117_v29, %v1629_v47  ;;  %v108_v46 = vadd.f32 %v107_v32, %v1649_v3  ;;  %v1698_v63 = vld [vmem:[%s2631_s0 + $0x68] sm:$0xff]  ;;  %v98_v36 = vadd.f32 %v97_v33, %v1654_v8  ;;  %v1704_v41 = vld [vmem:[%s2631_s0 + $0x18] sm:$0xff]  ;;  %v1719_v8 = vld [vmem:[%s2631_s0 + $0x20] sm:$0xff] }
  0x16   :  { %2688 = vst [vmem:[#allocation12_spill] sm:$0xff] %v1677_v35  ;;  %157 = vadd.xlane.f32.xlu0 %v156_v59  ;;  %v110_v34 = vsel %vm91_vm0, %v1665_v23, 0.0  ;;  %v1711_v59 = vld [vmem:[%s2631_s0 + $0x60] sm:$0xff]  ;;  %v87_v29 = vadd.f32 %v86_v55, %v1677_v35  ;;  %v101_v31 = vsel %vm91_vm0, %v1698_v63, 0.0 }
  0x17   :  { %2689 = vst [vmem:[#allocation13_spill] sm:$0xff] %v1689_v58  ;;  %v120_v32 = vadd.f32 %v119_v44, %v118_v42  ;;  %v109_v10 = vadd.f32 %v108_v46, %v1684_v54  ;;  %v99_v33 = vadd.f32 %v98_v36, %v1689_v58  ;;  %v1733_v36 = vld [vmem:[%s2631_s0 + $0x28] sm:$0xff] }
  0x18   :  { %2690 = vst [vmem:[#allocation14_spill] sm:$0xff] %v1698_v63  ;;  %139 = vadd.xlane.f32.xlu1 %v138_v52  ;;  %v88_v55 = vadd.f32 %v87_v29, %v1704_v41  ;;  %v92_v63 = vsel %vm91_vm0, %v1726_v22, 0.0 }
  0x19   :  { %v111_v42 = vadd.f32 %v110_v34, %v109_v10  ;;  %v100_v44 = vadd.f32 %v99_v33, %v1711_v59  ;;  %v643_v10 = vld [vmem:[%s2632_s3 + $0x38] sm:$0xff]  ;;  %v644_v34 = vld [vmem:[%s2632_s3 + $0x40] sm:$0xff] }
  0x1a   :  { %121 = vadd.xlane.f32.xlu2 %v120_v32  ;;  %v89_v52 = vadd.f32 %v88_v55, %v1719_v8 }
  0x1b   :  { %v102_v46 = vadd.f32 %v101_v31, %v100_v44  ;;  %v642_v31 = vld [vmem:[%s2632_s3 + $0x30] sm:$0xff] }
  0x1c   :  { %v90_v58 = vadd.f32 %v89_v52, %v1733_v36 }
  0x1e   :  { %112 = vadd.xlane.f32.xlu0 %v111_v42  ;;  %v93_v35 = vadd.f32 %v92_v63, %v90_v58  ;;  %v641_v58 = vld [vmem:[%s2632_s3 + $0x28] sm:$0xff] }
  0x20   :  { %103 = vadd.xlane.f32.xlu1 %v102_v46 }
  0x22   :  { %94 = vadd.xlane.f32.xlu2 %v93_v35 }
  0x39   :  { %682 = vperm.xlu1 %1290, %v643_v10  }
  0x3a   :  { %687 = vperm.xlu2 %1289, %v644_v34  }
  0x41   :  { %677 = vperm.xlu1 %1290, %v642_v31  }
  0x42   :  { %672 = vperm.xlu2 %1289, %v641_v58  }
  0x81   :  { %v167_v35 = vpop.xlane.xlu0 %166 }
  0x82   :  { %v185_v63 = vmul.f32 0.0012755102, %v167_v35 }
  0x83   :  { %v149_v29 = vpop.xlane.xlu1 %148 }
  0x84   :  { %v183_v32 = vmul.f32 0.0012755102, %v149_v29  ;;  %v1752_v33 = vsub.f32 %v1355_v0, %v185_v63  ;;  %v1755_v55 = vsub.f32 %v1360_v1, %v185_v63  ;;  %v1758_v42 = vsub.f32 %v1365_v2, %v185_v63 }
  0x85   :  { %v1761_v44 = vsub.f32 %v1415_v15, %v185_v63  ;;  %v131_v52 = vpop.xlane.xlu2 %130  ;;  %v1764_v46 = vsub.f32 %v1372_v4, %v185_v63  ;;  %v1776_v2 = vsub.f32 %v1387_v7, %v185_v63  ;;  %v1779_v15 = vsub.f32 %v1400_v12, %v185_v63 }
  0x86   :  { %v305_v10 = vmul.f32 %v1752_v33, %v1752_v33  ;;  %v306_v0 = vmul.f32 %v1755_v55, %v1755_v55  ;;  %v1771_v34 = vsub.f32 %v1377_v5, %v183_v32  ;;  %v1773_v1 = vmul.f32 0.0012755102, %v131_v52 }
  0x87   :  { %2691 = vst [vmem:[#allocation15_spill] sm:$0xff] %v1761_v44  ;;  %v307_v4 = vmul.f32 %v1758_v42, %v1758_v42  ;;  %v311_v31 = vmul.f32 %v1761_v44, %v1761_v44  ;;  %v1786_v35 = vsub.f32 %v1382_v6, %v183_v32  ;;  %v1789_v5 = vsub.f32 %v1393_v9, %v183_v32 }
  0x88   :  { %2692 = vst [vmem:[#allocation16_spill] sm:$0xff] %v1764_v46  ;;  %v384_v58 = vadd.f32 %v306_v0, %v305_v10  ;;  %v1792_v7 = vsub.f32 %v1405_v13, %v183_v32  ;;  %v1795_v12 = vsub.f32 %v1432_v20, %v183_v32  ;;  %v1798_v63 = vsub.f32 %v1468_v30, %v183_v32 }
  0x89   :  { %2693 = vst [vmem:[#allocation17_spill] sm:$0xff] %v1771_v34  ;;  %v158_v29 = vpop.xlane.xlu0 %157  ;;  %v1801_v52 = vsub.f32 %v1437_v21, %v183_v32  ;;  %v308_v6 = vmul.f32 %v1764_v46, %v1764_v46  ;;  %v291_v9 = vmul.f32 %v1771_v34, %v1771_v34  ;;  %v309_v13 = vmul.f32 %v1776_v2, %v1776_v2 }
  0x8a   :  { %2694 = vst [vmem:[#allocation18_spill] sm:$0xff] %v1776_v2  ;;  %v184_v10 = vmul.f32 0.0012755102, %v158_v29  ;;  %v385_v0 = vadd.f32 %v384_v58, %v307_v4  ;;  %v310_v20 = vmul.f32 %v1779_v15, %v1779_v15  ;;  %v292_v30 = vmul.f32 %v1786_v35, %v1786_v35 }
  0x8b   :  { %2695 = vst [vmem:[#allocation19_spill] sm:$0xff] %v1779_v15  ;;  %v140_v44 = vpop.xlane.xlu1 %139  ;;  %v293_v21 = vmul.f32 %v1789_v5, %v1789_v5  ;;  %v389_v4 = vsel %vm91_vm0, %v311_v31, 0.0  ;;  %v294_v58 = vmul.f32 %v1792_v7, %v1792_v7  ;;  %v295_v34 = vmul.f32 %v1795_v12, %v1795_v12 }
  0x8c   :  { %2696 = vst [vmem:[#allocation20_spill] sm:$0xff] %v1786_v35  ;;  %v182_v32 = vmul.f32 0.0012755102, %v140_v44  ;;  %v386_v29 = vadd.f32 %v385_v0, %v308_v6  ;;  %v296_v2 = vmul.f32 %v1798_v63, %v1798_v63  ;;  %v297_v15 = vmul.f32 %v1801_v52, %v1801_v52 }
  0x8d   :  { %2697 = vst [vmem:[#allocation21_spill] sm:$0xff] %v1789_v5  ;;  %v366_v35 = vadd.f32 %v292_v30, %v291_v9  ;;  %v1831_v31 = vsub.f32 %v1451_v26, %v184_v10  ;;  %v122_v6 = vpop.xlane.xlu2 %121  ;;  %v1840_v9 = vsub.f32 %v1456_v27, %v184_v10 }
  0x8e   :  { %2698 = vst [vmem:[#allocation22_spill] sm:$0xff] %v1795_v12  ;;  %v387_v46 = vadd.f32 %v386_v29, %v309_v13  ;;  %v1825_v5 = vsub.f32 %v1493_v38, %v182_v32  ;;  %v1828_v44 = vsub.f32 %v1498_v39, %v182_v32  ;;  %v1834_v12 = vsub.f32 %v1517_v45, %v182_v32 }
  0x8f   :  { %2699 = vst [vmem:[#allocation23_spill] sm:$0xff] %v1798_v63  ;;  %v367_v0 = vadd.f32 %v366_v35, %v293_v21  ;;  %v1837_v63 = vsub.f32 %v1530_v50, %v182_v32  ;;  %v1843_v38 = vsub.f32 %v1560_v60, %v182_v32  ;;  %v1846_v39 = vsub.f32 %v1597_v24, %v182_v32 }
  0x90   :  { %v388_v13 = vadd.f32 %v387_v46, %v310_v20  ;;  %v1849_v26 = vsub.f32 %v1565_v61, %v182_v32  ;;  %v284_v45 = vmul.f32 %v1825_v5, %v1825_v5  ;;  %v285_v50 = vmul.f32 %v1828_v44, %v1828_v44 }
  0x91   :  { %2700 = vst [vmem:[#allocation24_spill] sm:$0xff] %v1843_v38  ;;  %v113_v35 = vpop.xlane.xlu0 %112  ;;  %v368_v30 = vadd.f32 %v367_v0, %v294_v58  ;;  %v286_v27 = vmul.f32 %v1834_v12, %v1834_v12  ;;  %v180_v46 = vmul.f32 0.0012755102, %v122_v6  ;;  %v371_v20 = vsel %vm91_vm0, %v297_v15, 0.0 }
  0x92   :  { %2701 = vst [vmem:[#allocation25_spill] sm:$0xff] %v1846_v39  ;;  %v390_v60 = vadd.f32 %v389_v4, %v388_v13  ;;  %v1859_v24 = vsub.f32 %v1461_v28, %v184_v10  ;;  %v287_v32 = vmul.f32 %v1837_v63, %v1837_v63  ;;  %v290_v29 = vmul.f32 %v1849_v26, %v1849_v26 }
  0x93   :  { %2702 = vst [vmem:[#allocation26_spill] sm:$0xff] %v1849_v26  ;;  %v104_v61 = vpop.xlane.xlu1 %103  ;;  %v369_v21 = vadd.f32 %v368_v30, %v295_v34  ;;  %v357_v58 = vadd.f32 %v285_v50, %v284_v45  ;;  %v179_v0 = vmul.f32 0.0012755102, %v113_v35  ;;  %v288_v6 = vmul.f32 %v1843_v38, %v1843_v38 }
  0x94   :  { %391 = vadd.xlane.f32.xlu0 %v390_v60  ;;  %v289_v15 = vmul.f32 %v1846_v39, %v1846_v39  ;;  %v1870_v28 = vsub.f32 %v1488_v37, %v184_v10  ;;  %v1872_v4 = vmul.f32 0.0012755102, %v104_v61  ;;  %v1875_v30 = vsub.f32 %v1541_v53, %v184_v10 }
  0x95   :  { %v370_v34 = vadd.f32 %v369_v21, %v296_v2  ;;  %v358_v13 = vadd.f32 %v357_v58, %v286_v27  ;;  %v1878_v45 = vsub.f32 %v1511_v43, %v184_v10  ;;  %v1881_v35 = vsub.f32 %v1525_v49, %v184_v10 }
  0x96   :  { %v298_v50 = vmul.f32 %v1831_v31, %v1831_v31  ;;  %v299_v37 = vmul.f32 %v1840_v9, %v1840_v9  ;;  %v362_v2 = vsel %vm91_vm0, %v290_v29, 0.0  ;;  %v300_v53 = vmul.f32 %v1859_v24, %v1859_v24 }
  0x97   :  { %v372_v60 = vadd.f32 %v371_v20, %v370_v34  ;;  %v359_v61 = vadd.f32 %v358_v13, %v287_v32  ;;  %v301_v43 = vmul.f32 %v1870_v28, %v1870_v28  ;;  %v304_v49 = vmul.f32 %v1875_v30, %v1875_v30 }
  0x98   :  { %v375_v10 = vadd.f32 %v299_v37, %v298_v50  ;;  %v1895_v27 = vsub.f32 %v1535_v51, %v180_v46  ;;  %v1898_v20 = vsub.f32 %v1548_v56, %v180_v46  ;;  %v1901_v32 = vsub.f32 %v1553_v57, %v180_v46 }
  0x99   :  { %373 = vadd.xlane.f32.xlu2 %v372_v60  ;;  %v360_v21 = vadd.f32 %v359_v61, %v288_v6  ;;  %v1904_v29 = vsub.f32 %v1570_v62, %v180_v46  ;;  %v302_v58 = vmul.f32 %v1878_v45, %v1878_v45  ;;  %v1909_v13 = vsub.f32 %v1602_v25, %v180_v46 }
  0x9a   :  { %v376_v34 = vadd.f32 %v375_v10, %v300_v53  ;;  %v1912_v51 = vsub.f32 %v1629_v47, %v180_v46  ;;  %v1915_v56 = vsub.f32 %v1634_v48, %v180_v46  ;;  %v270_v57 = vmul.f32 %v1895_v27, %v1895_v27 }
  0x9b   :  { %2703 = vst [vmem:[#allocation27_spill] sm:$0xff] %v1909_v13  ;;  %v361_v6 = vadd.f32 %v360_v21, %v289_v15  ;;  %v271_v62 = vmul.f32 %v1898_v20, %v1898_v20  ;;  %v303_v50 = vmul.f32 %v1881_v35, %v1881_v35  ;;  %v380_v25 = vsel %vm91_vm0, %v304_v49, 0.0  ;;  %v95_v49 = vpop.xlane.xlu2 %94 }
  0x9c   :  { %2704 = vst [vmem:[#allocation28_spill] sm:$0xff] %v1912_v51  ;;  %v377_v37 = vadd.f32 %v376_v34, %v301_v43  ;;  %v272_v47 = vmul.f32 %v1901_v32, %v1901_v32  ;;  %v273_v48 = vmul.f32 %v1904_v29, %v1904_v29  ;;  %v274_v46 = vmul.f32 %v1909_v13, %v1909_v13 }
  0x9d   :  { %2705 = vst [vmem:[#allocation29_spill] sm:$0xff] %v1915_v56  ;;  %v363_v60 = vadd.f32 %v362_v2, %v361_v6  ;;  %v339_v15 = vadd.f32 %v271_v62, %v270_v57  ;;  %v1931_v53 = vsub.f32 %v1580_v11, %v179_v0  ;;  %v1934_v10 = vsub.f32 %v1585_v16, %v179_v0 }
  0x9e   :  { %v378_v61 = vadd.f32 %v377_v37, %v302_v58  ;;  %v1937_v43 = vsub.f32 %v1590_v17, %v179_v0  ;;  %v275_v2 = vmul.f32 %v1912_v51, %v1912_v51  ;;  %v276_v21 = vmul.f32 %v1915_v56, %v1915_v56 }
  0x9f   :  { %364 = vadd.xlane.f32.xlu0 %v363_v60  ;;  %v340_v34 = vadd.f32 %v339_v15, %v272_v47  ;;  %v1944_v58 = vsub.f32 %v1612_v40, %v179_v0  ;;  %v1947_v6 = vsub.f32 %v1649_v3, %v179_v0  ;;  %v1950_v16 = vsub.f32 %v1665_v23, %v179_v0 }
  0xa0   :  { %v379_v11 = vadd.f32 %v378_v61, %v303_v50  ;;  %v263_v17 = vmul.f32 %v1931_v53, %v1931_v53  ;;  %v1955_v62 = vsub.f32 %v1684_v54, %v179_v0  ;;  %v264_v37 = vmul.f32 %v1934_v10, %v1934_v10 }
  0xa1   :  { %2706 = vst [vmem:[#allocation30_spill] sm:$0xff] %v1947_v6  ;;  %v341_v57 = vadd.f32 %v340_v34, %v273_v48  ;;  %v265_v40 = vmul.f32 %v1937_v43, %v1937_v43  ;;  %v177_v50 = vmul.f32 0.0012755102, %v95_v49  ;;  %v266_v3 = vmul.f32 %v1944_v58, %v1944_v58 }
  0xa2   :  { %2707 = vst [vmem:[#allocation31_spill] sm:$0xff] %v1950_v16  ;;  %v381_v47 = vadd.f32 %v380_v25, %v379_v11  ;;  %v269_v23 = vmul.f32 %v1950_v16, %v1950_v16  ;;  %v330_v15 = vadd.f32 %v264_v37, %v263_v17  ;;  %v1967_v54 = vsub.f32 %v1410_v14, %v1773_v1  ;;  %v2710_v11 = vld [vmem:[#allocation3_spill] sm:$0xff]  ;;  %v2716_v16 = vld [vmem:[#allocation10_spill] sm:$0xff] }
  0xa3   :  { %2708 = vst [vmem:[#allocation32_spill] sm:$0xff] %v1955_v62  ;;  %v342_v60 = vadd.f32 %v341_v57, %v274_v46  ;;  %v1971_v0 = vsub.f32 %v1422_v18, %v1773_v1  ;;  %v344_v48 = vsel %vm91_vm0, %v276_v21, 0.0  ;;  %v267_v25 = vmul.f32 %v1947_v6, %v1947_v6  ;;  %v2709_v46 = vld [vmem:[#allocation2_spill] sm:$0xff]  ;;  %v2712_v21 = vld [vmem:[#allocation5_spill] sm:$0xff]  ;;  %v2717_v6 = vld [vmem:[#allocation11_spill] sm:$0xff] }
  0xa4   :  { %382 = vadd.xlane.f32.xlu1 %v381_v47  ;;  %v1978_v61 = vsub.f32 %v1427_v19, %v1773_v1  ;;  %v1982_v49 = vsub.f32 %v2709_v46, %v1773_v1  ;;  %v268_v34 = vmul.f32 %v1955_v62, %v1955_v62  ;;  %v331_v18 = vadd.f32 %v330_v15, %v265_v40  ;;  %v2714_v15 = vld [vmem:[#allocation4_spill] sm:$0xff] }
  0xa5   :  { %v343_v14 = vadd.f32 %v342_v60, %v275_v2  ;;  %v1988_v17 = vsub.f32 %v2710_v11, %v1773_v1  ;;  %v1992_v57 = vsub.f32 %v2712_v21, %v1773_v1  ;;  %v277_v19 = vmul.f32 %v1967_v54, %v1967_v54 }
  0xa6   :  { %v278_v37 = vmul.f32 %v1971_v0, %v1971_v0  ;;  %v279_v2 = vmul.f32 %v1978_v61, %v1978_v61  ;;  %v332_v60 = vadd.f32 %v331_v18, %v266_v3  ;;  %v335_v40 = vsel %vm91_vm0, %v269_v23, 0.0  ;;  %v2718_v23 = vld [vmem:[#allocation12_spill] sm:$0xff] }
  0xa7   :  { %2711 = vst [vmem:[#allocation2_spill] sm:$0xff] %v1988_v17  ;;  %v345_v47 = vadd.f32 %v344_v48, %v343_v14  ;;  %v2003_v46 = vsub.f32 %v2714_v15, %v1773_v1  ;;  %v280_v11 = vmul.f32 %v1982_v49, %v1982_v49  ;;  %v2008_v62 = vsub.f32 %v2716_v16, %v177_v50 }
  0xa8   :  { %2713 = vst [vmem:[#allocation3_spill] sm:$0xff] %v1992_v57  ;;  %v348_v21 = vadd.f32 %v278_v37, %v277_v19  ;;  %v2011_v56 = vsub.f32 %v2717_v6, %v177_v50  ;;  %v333_v51 = vadd.f32 %v332_v60, %v267_v25  ;;  %v281_v3 = vmul.f32 %v1988_v17, %v1988_v17 }
  0xa9   :  { %2715 = vst [vmem:[#allocation5_spill] sm:$0xff] %v2003_v46  ;;  %346 = vadd.xlane.f32.xlu2 %v345_v47  ;;  %v2016_v48 = vsub.f32 %v2718_v23, %v177_v50  ;;  %v2019_v1 = vsub.f32 %v1704_v41, %v177_v50  ;;  %v283_v14 = vmul.f32 %v1992_v57, %v1992_v57  ;;  %v2723_v23 = vld [vmem:[#allocation7_spill] sm:$0xff] }
  0xaa   :  { %v349_v18 = vadd.f32 %v348_v21, %v279_v2  ;;  %v2024_v16 = vsub.f32 %v1719_v8, %v177_v50  ;;  %v2027_v6 = vsub.f32 %v1726_v22, %v177_v50  ;;  %v334_v25 = vadd.f32 %v333_v51, %v268_v34  ;;  %v2722_v34 = vld [vmem:[#allocation6_spill] sm:$0xff] }
  0xab   :  { %v249_v19 = vmul.f32 %v2008_v62, %v2008_v62  ;;  %v250_v37 = vmul.f32 %v2011_v56, %v2011_v56  ;;  %v251_v41 = vmul.f32 %v2016_v48, %v2016_v48  ;;  %v282_v47 = vmul.f32 %v2003_v46, %v2003_v46  ;;  %v2724_v46 = vld [vmem:[#allocation8_spill] sm:$0xff] }
  0xac   :  { %2719 = vst [vmem:[#allocation4_spill] sm:$0xff] %v2024_v16  ;;  %v350_v2 = vadd.f32 %v349_v18, %v280_v11  ;;  %v2038_v8 = vsub.f32 %v1733_v36, %v177_v50  ;;  %v336_v60 = vadd.f32 %v335_v40, %v334_v25  ;;  %v252_v22 = vmul.f32 %v2019_v1, %v2019_v1  ;;  %v2725_v36 = vld [vmem:[#allocation9_spill] sm:$0xff] }
  0xad   :  { %2720 = vst [vmem:[#allocation10_spill] sm:$0xff] %v2027_v6  ;;  %v312_v51 = vadd.f32 %v250_v37, %v249_v19  ;;  %v2044_v15 = vsub.f32 %v2722_v34, %v1872_v4  ;;  %v2048_v57 = vsub.f32 %v2723_v23, %v1872_v4  ;;  %v2052_v11 = vsub.f32 %v2724_v46, %v1872_v4  ;;  %v2726_v37 = vld [vmem:[#allocation13_spill] sm:$0xff]  ;;  %v2728_v23 = vld [vmem:[#allocation14_spill] sm:$0xff] }
  0xae   :  { %2721 = vst [vmem:[#allocation11_spill] sm:$0xff] %v2038_v8  ;;  %v351_v21 = vadd.f32 %v350_v2, %v281_v3  ;;  %v2056_v50 = vsub.f32 %v2725_v36, %v1872_v4  ;;  %337 = vadd.xlane.f32.xlu0 %v336_v60  ;;  %v353_v40 = vsel %vm91_vm0, %v283_v14, 0.0  ;;  %v253_v18 = vmul.f32 %v2024_v16, %v2024_v16 }
  0xaf   :  { %v255_v3 = vmul.f32 %v2027_v6, %v2027_v6  ;;  %v313_v25 = vadd.f32 %v312_v51, %v251_v41  ;;  %v2065_v2 = vsub.f32 %v2726_v37, %v1872_v4  ;;  %v256_v46 = vmul.f32 %v2044_v15, %v2044_v15 }
  0xb0   :  { %v352_v19 = vadd.f32 %v351_v21, %v282_v47  ;;  %v257_v60 = vmul.f32 %v2048_v57, %v2048_v57  ;;  %v254_v14 = vmul.f32 %v2038_v8, %v2038_v8  ;;  %v2075_v36 = vsub.f32 %v2728_v23, %v1872_v4 }
  0xb1   :  { %2727 = vst [vmem:[#allocation12_spill] sm:$0xff] %v2065_v2  ;;  %v314_v34 = vadd.f32 %v313_v25, %v252_v22  ;;  %v258_v41 = vmul.f32 %v2052_v11, %v2052_v11  ;;  %v2081_v51 = vsub.f32 %v1711_v59, %v1872_v4  ;;  %v259_v21 = vmul.f32 %v2056_v50, %v2056_v50 }
  0xb2   :  { %2729 = vst [vmem:[#allocation6_spill] sm:$0xff] %v2075_v36  ;;  %v354_v47 = vadd.f32 %v353_v40, %v352_v19  ;;  %v321_v37 = vadd.f32 %v257_v60, %v256_v46  ;;  %v317_v22 = vsel %vm91_vm0, %v255_v3, 0.0  ;;  %v260_v25 = vmul.f32 %v2065_v2, %v2065_v2  ;;  %v638_v3 = vld [vmem:[%s2632_s3 + $0x10] sm:$0xff] }
  0xb3   :  { %2730 = vst [vmem:[#allocation7_spill] sm:$0xff] %v2081_v51  ;;  %v315_v6 = vadd.f32 %v314_v34, %v253_v18  ;;  %v262_v40 = vmul.f32 %v2075_v36, %v2075_v36  ;;  %v261_v59 = vmul.f32 %v2081_v51, %v2081_v51  ;;  %v2103_v34 = vpop.permute.xlu1 %682  ;;  %v419_v51 = vld [vmem:[%s2633_s2 + $0x40] sm:$0xff] }
  0xb4   :  { %355 = vadd.xlane.f32.xlu1 %v354_v47  ;;  %v322_v23 = vadd.f32 %v321_v37, %v258_v41 }
  0xb5   :  { %v316_v8 = vadd.f32 %v315_v6, %v254_v14  ;;  %v326_v18 = vsel %vm91_vm0, %v262_v40, 0.0  ;;  %v639_v6 = vld [vmem:[%s2632_s3 + $0x18] sm:$0xff]  ;;  %v2099_v14 = vpop.permute.xlu2 %687 }
  0xb6   :  { %v323_v4 = vadd.f32 %v322_v23, %v259_v21  ;;  %v640_v23 = vld [vmem:[%s2632_s3 + $0x20] sm:$0xff] }
  0xb7   :  { %v318_v19 = vadd.f32 %v317_v22, %v316_v8 }
  0xb8   :  { %v324_v16 = vadd.f32 %v323_v4, %v260_v25 }
  0xb9   :  { %319 = vadd.xlane.f32.xlu2 %v318_v19 }
  0xba   :  { %v325_v46 = vadd.f32 %v324_v16, %v261_v59 }
  0xbb   :  { %v2105_v22 = vpop.permute.xlu1 %677 }
  0xbc   :  { %v327_v60 = vadd.f32 %v326_v18, %v325_v46 }
  0xbd   :  { %v2101_v8 = vpop.permute.xlu2 %672 }
  0xbe   :  { %328 = vadd.xlane.f32.xlu1 %v327_v60 }
  0xc2   :  { %667 = vperm.xlu0 %1291, %v640_v23  }
  0xd1   :  { %657 = vperm.xlu2 %1289, %v638_v3  }
  0xd7   :  { %662 = vperm.xlu1 %1290, %v639_v6  }
 0x107   :  { %v392_v41 = vpop.xlane.xlu0 %391 }
 0x108   :  { %v410_v16 = vmul.f32 0.0012755102, %v392_v41 }
 0x10a   :  { %v428_v47 = vadd.f32 1e-05, %v410_v16 }
 0x10c   :  { %1292 = vrsqrt.f32 %v428_v47  ;;  %v374_v21 = vpop.xlane.xlu2 %373  ;;  %vm515_vm2 = vweird.f32 %v428_v47 }
 0x10d   :  { %v408_v37 = vmul.f32 0.0012755102, %v374_v21 }
 0x10f   :  { %v426_v25 = vadd.f32 1e-05, %v408_v37 }
 0x111   :  { %1294 = vrsqrt.f32 %v426_v25  ;;  %vm495_vm5 = vweird.f32 %v426_v25 }
 0x112   :  { %v1293_v40 = vpop.eup %1292  ;;  %v365_v59 = vpop.xlane.xlu0 %364 }
 0x113   :  { %v510_v4 = vmul.f32 %v1293_v40, %v428_v47  ;;  %v407_v19 = vmul.f32 0.0012755102, %v365_v59  ;;  %vm516_vm1 = vweird.f32 %v1293_v40  ;;  %v417_v47 = vld [vmem:[%s2633_s2 + $0x30] sm:$0xff] }
 0x114   :  { %vm517_vm3 = vmor %vm515_vm2, %vm516_vm1 }
 0x115   :  { %v511_v18 = vmul.f32 %v1293_v40, %v510_v4  ;;  %v425_v46 = vadd.f32 1e-05, %v407_v19 }
 0x117   :  { %v1295_v60 = vpop.eup %1294  ;;  %v512_v3 = vmul.f32 0.5, %v511_v18  ;;  %1296 = vrsqrt.f32 %v425_v46  ;;  %v383_v6 = vpop.xlane.xlu1 %382  ;;  %vm485_vm8 = vweird.f32 %v425_v46 }
 0x118   :  { %v490_v41 = vmul.f32 %v1295_v60, %v426_v25  ;;  %v409_v16 = vmul.f32 0.0012755102, %v383_v6  ;;  %vm496_vm4 = vweird.f32 %v1295_v60  ;;  %v416_v25 = vld [vmem:[%s2633_s2 + $0x28] sm:$0xff] }
 0x119   :  { %v513_v21 = vsub.f32 1.5, %v512_v3  ;;  %vm497_vm6 = vmor %vm495_vm5, %vm496_vm4 }
 0x11a   :  { %v491_v37 = vmul.f32 %v1295_v60, %v490_v41  ;;  %v427_v36 = vadd.f32 1e-05, %v409_v16 }
 0x11b   :  { %v514_v23 = vmul.f32 %v1293_v40, %v513_v21 }
 0x11c   :  { %v492_v59 = vmul.f32 0.5, %v491_v37  ;;  %1298 = vrsqrt.f32 %v427_v36  ;;  %v347_v4 = vpop.xlane.xlu2 %346  ;;  %vm505_vm11 = vweird.f32 %v427_v36 }
 0x11d   :  { %v1297_v19 = vpop.eup %1296  ;;  %v405_v18 = vmul.f32 0.0012755102, %v347_v4  ;;  %v518_v2 = vsel %vm517_vm3, %v1293_v40, %v514_v23 }
 0x11e   :  { %v493_v13 = vsub.f32 1.5, %v492_v59  ;;  %v480_v6 = vmul.f32 %v1297_v19, %v425_v46  ;;  %v527_v3 = vmul.f32 %v518_v2, %v419_v51  ;;  %vm486_vm7 = vweird.f32 %v1297_v19  ;;  %v418_v46 = vld [vmem:[%s2633_s2 + $0x38] sm:$0xff] }
 0x11f   :  { %v423_v17 = vadd.f32 1e-05, %v405_v18  ;;  %vm487_vm9 = vmor %vm485_vm8, %vm486_vm7 }
 0x120   :  { %v481_v41 = vmul.f32 %v1297_v19, %v480_v6  ;;  %570 = vperm.xlu0 %1291, %v527_v3   ;;  %v494_v16 = vmul.f32 %v1295_v60, %v493_v13 }
 0x121   :  { %1300 = vrsqrt.f32 %v423_v17  ;;  %v338_v26 = vpop.xlane.xlu0 %337  ;;  %vm465_vm13 = vweird.f32 %v423_v17 }
 0x122   :  { %v1299_v21 = vpop.eup %1298  ;;  %v482_v37 = vmul.f32 0.5, %v481_v41  ;;  %v498_v4 = vsel %vm497_vm6, %v1295_v60, %v494_v16  ;;  %v404_v23 = vmul.f32 0.0012755102, %v338_v26 }
 0x123   :  { %v500_v40 = vmul.f32 %v1299_v21, %v427_v36  ;;  %v525_v59 = vmul.f32 %v498_v4, %v417_v47  ;;  %vm506_vm10 = vweird.f32 %v1299_v21 }
 0x124   :  { %v483_v39 = vsub.f32 1.5, %v482_v37  ;;  %v422_v51 = vadd.f32 1e-05, %v404_v23  ;;  %vm507_vm12 = vmor %vm505_vm11, %vm506_vm10 }
 0x125   :  { %v501_v2 = vmul.f32 %v1299_v21, %v500_v40  ;;  %560 = vperm.xlu2 %1289, %v525_v59  }
 0x126   :  { %v484_v13 = vmul.f32 %v1297_v19, %v483_v39  ;;  %1302 = vrsqrt.f32 %v422_v51  ;;  %vm455_vm1 = vweird.f32 %v422_v51 }
 0x127   :  { %v1301_v18 = vpop.eup %1300  ;;  %v502_v6 = vmul.f32 0.5, %v501_v2  ;;  %v356_v3 = vpop.xlane.xlu1 %355 }
 0x128   :  { %v460_v60 = vmul.f32 %v1301_v18, %v423_v17  ;;  %v406_v41 = vmul.f32 0.0012755102, %v356_v3  ;;  %v488_v26 = vsel %vm487_vm9, %v1297_v19, %v484_v13  ;;  %vm466_vm14 = vweird.f32 %v1301_v18 }
 0x129   :  { %v503_v47 = vsub.f32 1.5, %v502_v6  ;;  %v524_v16 = vmul.f32 %v488_v26, %v416_v25  ;;  %vm467_vm15 = vmor %vm465_vm13, %vm466_vm14  ;;  %vm819_vm13 = vcmask 588800  }
 0x12a   :  { %v461_v37 = vmul.f32 %v1301_v18, %v460_v60  ;;  %v424_v4 = vadd.f32 1e-05, %v406_v41 }
 0x12b   :  { %v504_v40 = vmul.f32 %v1299_v21, %v503_v47 }
 0x12c   :  { %v462_v39 = vmul.f32 0.5, %v461_v37  ;;  %1304 = vrsqrt.f32 %v424_v4  ;;  %v320_v23 = vpop.xlane.xlu2 %319  ;;  %v1303_v59 = vpop.eup %1302  ;;  %vm475_vm5 = vweird.f32 %v424_v4 }
 0x12d   :  { %v402_v2 = vmul.f32 0.0012755102, %v320_v23  ;;  %v508_v38 = vsel %vm507_vm12, %v1299_v21, %v504_v40  ;;  %555 = vperm.xlu2 %1289, %v524_v16   ;;  %v450_v13 = vmul.f32 %v1303_v59, %v422_v51  ;;  %vm456_vm2 = vweird.f32 %v1303_v59  ;;  %v414_v21 = vld [vmem:[%s2633_s2 + $0x18] sm:$0xff]  ;;  %v413_v40 = vld [vmem:[%s2633_s2 + $0x10] sm:$0xff] }
 0x12e   :  { %v463_v19 = vsub.f32 1.5, %v462_v39  ;;  %v526_v6 = vmul.f32 %v508_v38, %v418_v46  ;;  %vm457_vm3 = vmor %vm455_vm1, %vm456_vm2 }
 0x12f   :  { %v420_v25 = vadd.f32 1e-05, %v402_v2  ;;  %v451_v36 = vmul.f32 %v1303_v59, %v450_v13 }
 0x130   :  { %565 = vperm.xlu1 %1290, %v526_v6   ;;  %v464_v3 = vmul.f32 %v1301_v18, %v463_v19 }
 0x131   :  { %1306 = vrsqrt.f32 %v420_v25  ;;  %v329_v60 = vpop.xlane.xlu1 %328  ;;  %v452_v26 = vmul.f32 0.5, %v451_v36  ;;  %vm435_vm7 = vweird.f32 %v420_v25 }
 0x132   :  { %v1305_v41 = vpop.eup %1304  ;;  %v403_v47 = vmul.f32 0.0012755102, %v329_v60  ;;  %v468_v38 = vsel %vm467_vm15, %v1301_v18, %v464_v3  ;;  %v415_v3 = vld [vmem:[%s2633_s2 + $0x20] sm:$0xff] }
 0x133   :  { %v470_v37 = vmul.f32 %v1305_v41, %v424_v4  ;;  %v453_v17 = vsub.f32 1.5, %v452_v26  ;;  %v522_v23 = vmul.f32 %v468_v38, %v414_v21  ;;  %vm476_vm4 = vweird.f32 %v1305_v41  ;;  %v636_v4 = vld [vmem:[%s2632_s3] sm:$0xff] }
 0x134   :  { %v421_v16 = vadd.f32 1e-05, %v403_v47  ;;  %vm477_vm6 = vmor %vm475_vm5, %vm476_vm4 }
 0x135   :  { %v471_v46 = vmul.f32 %v1305_v41, %v470_v37  ;;  %v454_v39 = vmul.f32 %v1303_v59, %v453_v17 }
 0x136   :  { %1308 = vrsqrt.f32 %v421_v16  ;;  %vm445_vm11 = vweird.f32 %v421_v16 }
 0x137   :  { %v1307_v51 = vpop.eup %1306  ;;  %v472_v2 = vmul.f32 0.5, %v471_v46  ;;  %v458_v13 = vsel %vm457_vm3, %v1303_v59, %v454_v39  ;;  %v411_v46 = vld [vmem:[%s2633_s2] sm:$0xff] }
 0x138   :  { %v430_v19 = vmul.f32 %v1307_v51, %v420_v25  ;;  %545 = vperm.xlu1 %1290, %v522_v23   ;;  %v521_v36 = vmul.f32 %v458_v13, %v413_v40  ;;  %vm436_vm8 = vweird.f32 %v1307_v51 }
 0x139   :  { %v473_v6 = vsub.f32 1.5, %v472_v2  ;;  %vm437_vm9 = vmor %vm435_vm7, %vm436_vm8 }
 0x13a   :  { %v431_v18 = vmul.f32 %v1307_v51, %v430_v19  ;;  %540 = vperm.xlu2 %1289, %v521_v36   ;;  %v637_v36 = vld [vmem:[%s2632_s3 + $0x8] sm:$0xff] }
 0x13b   :  { %v474_v60 = vmul.f32 %v1305_v41, %v473_v6 }
 0x13c   :  { %v1309_v26 = vpop.eup %1308  ;;  %v432_v47 = vmul.f32 0.5, %v431_v18  ;;  %v2145_v18 = vpop.permute.xlu2 %657 }
 0x13d   :  { %v440_v37 = vmul.f32 %v1309_v26, %v421_v16  ;;  %v478_v21 = vsel %vm477_vm6, %v1305_v41, %v474_v60  ;;  %vm446_vm10 = vweird.f32 %v1309_v26  ;;  %v412_v41 = vld [vmem:[%s2633_s2 + $0x8] sm:$0xff] }
 0x13e   :  { %v433_v38 = vsub.f32 1.5, %v432_v47  ;;  %v523_v59 = vmul.f32 %v478_v21, %v415_v3  ;;  %vm447_vm12 = vmor %vm445_vm11, %vm446_vm10  ;;  %v2731_v47 = vld [vmem:[#allocation16_spill] sm:$0xff] }
 0x13f   :  { %v441_v17 = vmul.f32 %v1309_v26, %v440_v37 }
 0x140   :  { %550 = vperm.xlu0 %1291, %v523_v59   ;;  %v434_v40 = vmul.f32 %v1307_v51, %v433_v38 }
 0x141   :  { %v442_v39 = vmul.f32 0.5, %v441_v17 }
 0x142   :  { %v438_v23 = vsel %vm437_vm9, %v1307_v51, %v434_v40  ;;  %647 = vperm.xlu2 %1289, %v636_v4   ;;  %v2143_v51 = vpop.permute.xlu0 %667 }
 0x143   :  { %v443_v2 = vsub.f32 1.5, %v442_v39  ;;  %v519_v25 = vmul.f32 %v438_v23, %v411_v46  ;;  %v2732_v23 = vld [vmem:[#allocation17_spill] sm:$0xff] }
 0x145   :  { %v444_v19 = vmul.f32 %v1309_v26, %v443_v2  ;;  %530 = vperm.xlu1 %1290, %v519_v25   ;;  %v2733_v25 = vld [vmem:[#allocation20_spill] sm:$0xff] }
 0x147   :  { %v448_v13 = vsel %vm447_vm12, %v1309_v26, %v444_v19 }
 0x148   :  { %v520_v6 = vmul.f32 %v448_v13, %v412_v41  ;;  %v2734_v13 = vld [vmem:[#allocation21_spill] sm:$0xff] }
 0x14a   :  { %535 = vperm.xlu0 %1291, %v520_v6  }
 0x152   :  { %652 = vperm.xlu0 %1291, %v637_v36  }
 0x17f   :  { %v2157_v21 = vpop.permute.xlu2 %560 }
 0x180   :  { %v615_v2 = vmul.f32 %v2157_v21, %v2732_v23  ;;  %v616_v41 = vmul.f32 %v2157_v21, %v2733_v25  ;;  %v617_v6 = vmul.f32 %v2157_v21, %v2734_v13  ;;  %v618_v36 = vmul.f32 %v2157_v21, %v1792_v7 }
 0x182   :  { %v732_v7 = vadd.f32 %v2105_v22, %v615_v2 }
 0x184   :  { %v795_v25 = vmax.f32 %v732_v7, 0.0 }
 0x187   :  { %v2165_v39 = vpop.permute.xlu2 %555 }
 0x192   :  { %v2147_v16 = vpop.permute.xlu0 %570 }
 0x193   :  { %v629_v3 = vmul.f32 %v2147_v16, %v1752_v33  ;;  %v630_v60 = vmul.f32 %v2147_v16, %v1755_v55  ;;  %v631_v26 = vmul.f32 %v2147_v16, %v1758_v42  ;;  %v632_v37 = vmul.f32 %v2147_v16, %v2731_v47  ;;  %v2163_v42 = vpop.permute.xlu1 %662 }
 0x195   :  { %v746_v38 = vadd.f32 %v2099_v14, %v629_v3  ;;  %v747_v59 = vadd.f32 %v2099_v14, %v630_v60  ;;  %v748_v17 = vadd.f32 %v2099_v14, %v631_v26  ;;  %v749_v4 = vadd.f32 %v2099_v14, %v632_v37 }
 0x196   :  { %v608_v3 = vmul.f32 %v2165_v39, %v1825_v5  ;;  %v609_v60 = vmul.f32 %v2165_v39, %v1828_v44  ;;  %v610_v5 = vmul.f32 %v2165_v39, %v1834_v12  ;;  %v611_v44 = vmul.f32 %v2165_v39, %v1837_v63 }
 0x197   :  { %v809_v33 = vmax.f32 %v746_v38, 0.0  ;;  %v810_v46 = vmax.f32 %v747_v59, 0.0  ;;  %v811_v40 = vmax.f32 %v748_v17, 0.0  ;;  %v812_v55 = vmax.f32 %v749_v4, 0.0 }
 0x198   :  { %v733_v59 = vadd.f32 %v2105_v22, %v616_v41  ;;  %v735_v4 = vadd.f32 %v2105_v22, %v618_v36  ;;  %v727_v23 = vadd.f32 %v2101_v8, %v610_v5  ;;  %v728_v2 = vadd.f32 %v2101_v8, %v611_v44 }
 0x199   :  { %836 = vmatpush.msra.mxu0 %v809_v33  ;;  %862 = vmatpush.msra.mxu1 %v810_v46  ;;  %v725_v33 = vadd.f32 %v2101_v8, %v608_v3  ;;  %v726_v46 = vadd.f32 %v2101_v8, %v609_v60 }
 0x19a   :  { %888 = vmatpush.msra.mxu2 %v811_v40  ;;  %914 = vmatpush.msra.mxu3 %v812_v55  ;;  %v796_v41 = vmax.f32 %v733_v59, 0.0  ;;  %v790_v60 = vmax.f32 %v727_v23, 0.0 }
 0x19b   :  { %v788_v36 = vmax.f32 %v725_v33, 0.0  ;;  %v789_v3 = vmax.f32 %v726_v46, 0.0 }
 0x1a2   :  { %v2171_v19 = vpop.permute.xlu1 %565 }
 0x1a3   :  { %v622_v26 = vmul.f32 %v2171_v19, %v1831_v31  ;;  %v623_v47 = vmul.f32 %v2171_v19, %v1840_v9  ;;  %v624_v37 = vmul.f32 %v2171_v19, %v1859_v24  ;;  %v625_v38 = vmul.f32 %v2171_v19, %v1870_v28 }
 0x1a4   :  { %v734_v28 = vadd.f32 %v2105_v22, %v617_v6  ;;  %v798_v6 = vmax.f32 %v735_v4, 0.0 }
 0x1a5   :  { %v739_v31 = vadd.f32 %v2103_v34, %v622_v26  ;;  %v740_v9 = vadd.f32 %v2103_v34, %v623_v47  ;;  %v741_v17 = vadd.f32 %v2103_v34, %v624_v37  ;;  %v742_v24 = vadd.f32 %v2103_v34, %v625_v38  ;;  %v2207_v37 = vpop.permute.xlu2 %540 }
 0x1a6   :  { %v797_v13 = vmax.f32 %v734_v28, 0.0  ;;  %v791_v26 = vmax.f32 %v728_v2, 0.0 }
 0x1a7   :  { %v802_v12 = vmax.f32 %v739_v31, 0.0  ;;  %v803_v40 = vmax.f32 %v740_v9, 0.0  ;;  %v804_v55 = vmax.f32 %v741_v17, 0.0  ;;  %v805_v63 = vmax.f32 %v742_v24, 0.0 }
 0x1a8   :  { %v587_v31 = vmul.f32 %v2207_v37, %v1931_v53  ;;  %v588_v9 = vmul.f32 %v2207_v37, %v1934_v10  ;;  %v589_v53 = vmul.f32 %v2207_v37, %v1937_v43  ;;  %v590_v10 = vmul.f32 %v2207_v37, %v1944_v58 }
 0x1a9   :  { %837 = vmatpush.msra.mxu0 %v802_v12  ;;  %863 = vmatpush.msra.mxu1 %v803_v40 }
 0x1aa   :  { %889 = vmatpush.msra.mxu2 %v804_v55  ;;  %915 = vmatpush.msra.mxu3 %v805_v63  ;;  %v2205_v47 = vpop.permute.xlu1 %545  ;;  %v704_v33 = vadd.f32 %v2145_v18, %v587_v31  ;;  %v705_v46 = vadd.f32 %v2145_v18, %v588_v9  ;;  %v706_v55 = vadd.f32 %v2145_v18, %v589_v53 }
 0x1ab   :  { %838 = vmatpush.msra.mxu0 %v795_v25  ;;  %864 = vmatpush.msra.mxu1 %v796_v41  ;;  %v594_v38 = vmul.f32 %v2205_v47, %v1895_v27  ;;  %v595_v7 = vmul.f32 %v2205_v47, %v1898_v20  ;;  %v596_v5 = vmul.f32 %v2205_v47, %v1901_v32 }
 0x1ac   :  { %890 = vmatpush.msra.mxu2 %v797_v13  ;;  %916 = vmatpush.msra.mxu3 %v798_v6  ;;  %v597_v44 = vmul.f32 %v2205_v47, %v1904_v29  ;;  %v707_v63 = vadd.f32 %v2145_v18, %v590_v10  ;;  %v767_v13 = vmax.f32 %v704_v33, 0.0  ;;  %v768_v6 = vmax.f32 %v705_v46, 0.0  ;;  %v2738_v10 = vld [vmem:[#allocation19_spill] sm:$0xff] }
 0x1ad   :  { %839 = vmatpush.msra.mxu0 %v788_v36  ;;  %865 = vmatpush.msra.mxu1 %v789_v3  ;;  %v711_v29 = vadd.f32 %v2163_v42, %v594_v38  ;;  %v712_v24 = vadd.f32 %v2163_v42, %v595_v7  ;;  %v769_v3 = vmax.f32 %v706_v55, 0.0  ;;  %v2740_v55 = vld [vmem:[#allocation24_spill] sm:$0xff] }
 0x1ae   :  { %891 = vmatpush.msra.mxu2 %v790_v60  ;;  %917 = vmatpush.msra.mxu3 %v791_v26  ;;  %v714_v4 = vadd.f32 %v2163_v42, %v597_v44  ;;  %v770_v60 = vmax.f32 %v707_v63, 0.0  ;;  %v612_v63 = vmul.f32 %v2165_v39, %v2740_v55 }
 0x1af   :  { %v774_v23 = vmax.f32 %v711_v29, 0.0  ;;  %v775_v2 = vmax.f32 %v712_v24, 0.0 }
 0x1b0   :  { %v777_v41 = vmax.f32 %v714_v4, 0.0  ;;  %v626_v4 = vmul.f32 %v2171_v19, %v1878_v45 }
 0x1b2   :  { %v2213_v59 = vpop.permute.xlu0 %550 }
 0x1b3   :  { %v601_v27 = vmul.f32 %v2213_v59, %v1967_v54  ;;  %v602_v20 = vmul.f32 %v2213_v59, %v1971_v0  ;;  %v603_v17 = vmul.f32 %v2213_v59, %v1978_v61  ;;  %v604_v32 = vmul.f32 %v2213_v59, %v1982_v49 }
 0x1b4   :  { %v713_v49 = vadd.f32 %v2163_v42, %v596_v5  ;;  %v2735_v5 = vld [vmem:[#allocation22_spill] sm:$0xff] }
 0x1b5   :  { %v718_v54 = vadd.f32 %v2143_v51, %v601_v27  ;;  %v719_v0 = vadd.f32 %v2143_v51, %v602_v20  ;;  %v720_v28 = vadd.f32 %v2143_v51, %v603_v17  ;;  %v721_v61 = vadd.f32 %v2143_v51, %v604_v32  ;;  %v2736_v27 = vld [vmem:[#allocation23_spill] sm:$0xff]  ;;  %v2265_v32 = vpop.permute.xlu2 %647 }
 0x1b6   :  { %v776_v25 = vmax.f32 %v713_v49, 0.0  ;;  %v619_v44 = vmul.f32 %v2157_v21, %v2735_v5  ;;  %v620_v20 = vmul.f32 %v2157_v21, %v2736_v27  ;;  %v621_v17 = vmul.f32 %v2157_v21, %v1801_v52  ;;  %v2737_v21 = vld [vmem:[#allocation18_spill] sm:$0xff] }
 0x1b7   :  { %v781_v43 = vmax.f32 %v718_v54, 0.0  ;;  %v782_v12 = vmax.f32 %v719_v0, 0.0  ;;  %v783_v40 = vmax.f32 %v720_v28, 0.0  ;;  %v784_v58 = vmax.f32 %v721_v61, 0.0  ;;  %v2249_v26 = vpop.permute.xlu1 %530  ;;  %v2739_v61 = vld [vmem:[#allocation15_spill] sm:$0xff] }
 0x1b8   :  { %v573_v38 = vmul.f32 %v2249_v26, %v2008_v62  ;;  %v574_v7 = vmul.f32 %v2249_v26, %v2011_v56  ;;  %v575_v31 = vmul.f32 %v2249_v26, %v2016_v48  ;;  %v576_v9 = vmul.f32 %v2249_v26, %v2019_v1 }
 0x1b9   :  { %840 = vmatpush.msra.mxu0 %v781_v43  ;;  %866 = vmatpush.msra.mxu1 %v782_v12  ;;  %v633_v53 = vmul.f32 %v2147_v16, %v2737_v21  ;;  %v635_v49 = vmul.f32 %v2147_v16, %v2739_v61  ;;  %v736_v5 = vadd.f32 %v2105_v22, %v619_v44 }
 0x1ba   :  { %892 = vmatpush.msra.mxu2 %v783_v40  ;;  %918 = vmatpush.msra.mxu3 %v784_v58  ;;  %v690_v24 = vadd.f32 %v2265_v32, %v573_v38  ;;  %v691_v52 = vadd.f32 %v2265_v32, %v574_v7  ;;  %v692_v0 = vadd.f32 %v2265_v32, %v575_v31 }
 0x1bb   :  { %841 = vmatpush.msra.mxu0 %v774_v23  ;;  %867 = vmatpush.msra.mxu1 %v775_v2  ;;  %v693_v28 = vadd.f32 %v2265_v32, %v576_v9  ;;  %v627_v40 = vmul.f32 %v2171_v19, %v1881_v35  ;;  %v628_v58 = vmul.f32 %v2171_v19, %v1875_v30  ;;  %v2741_v23 = vld [vmem:[#allocation25_spill] sm:$0xff]  ;;  %v2306_v30 = vld [vmem:[%s2634_s1] sm:$0xff] }
 0x1bc   :  { %v2247_v36 = vpop.permute.xlu0 %535  ;;  %893 = vmatpush.msra.mxu2 %v776_v25  ;;  %919 = vmatpush.msra.mxu3 %v777_v41  ;;  %v613_v2 = vmul.f32 %v2165_v39, %v2741_v23  ;;  %v754_v45 = vmax.f32 %v691_v52, 0.0  ;;  %v750_v25 = vadd.f32 %v2099_v14, %v633_v53  ;;  %v755_v35 = vmax.f32 %v692_v0, 0.0  ;;  %v2745_v52 = vld [vmem:[#allocation5_spill] sm:$0xff]  ;;  %v2746_v53 = vld [vmem:[#allocation3_spill] sm:$0xff] }
 0x1bd   :  { %842 = vmatpush.msra.mxu0 %v767_v13  ;;  %868 = vmatpush.msra.mxu1 %v768_v6  ;;  %v580_v56 = vmul.f32 %v2247_v36, %v2044_v15  ;;  %v581_v62 = vmul.f32 %v2247_v36, %v2048_v57  ;;  %v582_v48 = vmul.f32 %v2247_v36, %v2052_v11  ;;  %v756_v13 = vmax.f32 %v693_v28, 0.0  ;;  %v2749_v28 = vld [vmem:[#allocation30_spill] sm:$0xff] }
 0x1be   :  { %894 = vmatpush.msra.mxu2 %v769_v3  ;;  %920 = vmatpush.msra.mxu3 %v770_v60  ;;  %v583_v1 = vmul.f32 %v2247_v36, %v2056_v50  ;;  %v634_v15 = vmul.f32 %v2147_v16, %v2738_v10  ;;  %v753_v16 = vmax.f32 %v690_v24, 0.0  ;;  %v752_v19 = vadd.f32 %v2099_v14, %v635_v49  ;;  %v2742_v3 = vld [vmem:[#allocation26_spill] sm:$0xff]  ;;  %v2750_v49 = vld [vmem:[#allocation32_spill] sm:$0xff] }
 0x1bf   :  { %v743_v6 = vadd.f32 %v2103_v34, %v626_v4  ;;  %v614_v60 = vmul.f32 %v2165_v39, %v2742_v3  ;;  %v744_v38 = vadd.f32 %v2103_v34, %v627_v40  ;;  %v745_v7 = vadd.f32 %v2103_v34, %v628_v58  ;;  %v2351_v58 = vld [vmem:[%s2634_s1 + $0x8] sm:$0xff]  ;;  %v2754_v3 = vld [vmem:[#allocation6_spill] sm:$0xff] }
 0x1c0   :  { %v751_v41 = vadd.f32 %v2099_v14, %v634_v15  ;;  %v813_v14 = vmax.f32 %v750_v25, 0.0  ;;  %v737_v31 = vadd.f32 %v2105_v22, %v620_v20  ;;  %v738_v9 = vadd.f32 %v2105_v22, %v621_v17  ;;  %v2743_v20 = vld [vmem:[#allocation2_spill] sm:$0xff]  ;;  %v2744_v17 = vld [vmem:[#allocation27_spill] sm:$0xff] }
 0x1c1   :  { %v815_v39 = vmax.f32 %v752_v19, 0.0  ;;  %v729_v27 = vadd.f32 %v2101_v8, %v612_v63  ;;  %v731_v44 = vadd.f32 %v2101_v8, %v614_v60  ;;  %v605_v22 = vmul.f32 %v2213_v59, %v2743_v20  ;;  %v2753_v19 = vld [vmem:[#allocation7_spill] sm:$0xff] }
 0x1c2   :  { %v814_v34 = vmax.f32 %v751_v41, 0.0  ;;  %v808_v24 = vmax.f32 %v745_v7, 0.0  ;;  %v606_v21 = vmul.f32 %v2213_v59, %v2745_v52  ;;  %v607_v10 = vmul.f32 %v2213_v59, %v2746_v53  ;;  %v2752_v41 = vld [vmem:[#allocation12_spill] sm:$0xff] }
 0x1c3   :  { %v799_v15 = vmax.f32 %v736_v5, 0.0  ;;  %v591_v61 = vmul.f32 %v2207_v37, %v2749_v28  ;;  %v592_v4 = vmul.f32 %v2207_v37, %v2750_v49  ;;  %v792_v59 = vmax.f32 %v729_v27, 0.0  ;;  %v2755_v7 = vld [vmem:[#allocation4_spill] sm:$0xff]  ;;  %v2756_v5 = vld [vmem:[#allocation11_spill] sm:$0xff]  ;;  %v2757_v27 = vld [vmem:[#allocation10_spill] sm:$0xff] }
 0x1c4   :  { %v2275_v29 = vpop.permute.xlu0 %652  ;;  %v723_v55 = vadd.f32 %v2143_v51, %v606_v21  ;;  %v724_v63 = vadd.f32 %v2143_v51, %v607_v10  ;;  %v586_v60 = vmul.f32 %v2247_v36, %v2754_v3 }
 0x1c5   :  { %v697_v57 = vadd.f32 %v2275_v29, %v580_v56  ;;  %v698_v54 = vadd.f32 %v2275_v29, %v581_v62  ;;  %v699_v11 = vadd.f32 %v2275_v29, %v582_v48  ;;  %v700_v50 = vadd.f32 %v2275_v29, %v583_v1 }
 0x1c6   :  { %v730_v56 = vadd.f32 %v2101_v8, %v613_v2  ;;  %v806_v62 = vmax.f32 %v743_v6, 0.0  ;;  %v598_v48 = vmul.f32 %v2205_v47, %v2744_v17  ;;  %v807_v1 = vmax.f32 %v744_v38, 0.0 }
 0x1c7   :  { %v760_v33 = vmax.f32 %v697_v57, 0.0  ;;  %v761_v46 = vmax.f32 %v698_v54, 0.0  ;;  %v762_v43 = vmax.f32 %v699_v11, 0.0  ;;  %v763_v12 = vmax.f32 %v700_v50, 0.0  ;;  %v2747_v57 = vld [vmem:[#allocation28_spill] sm:$0xff]  ;;  %v2748_v50 = vld [vmem:[#allocation29_spill] sm:$0xff] }
 0x1c8   :  { %v800_v8 = vmax.f32 %v737_v31, 0.0  ;;  %v599_v54 = vmul.f32 %v2205_v47, %v2747_v57  ;;  %v801_v11 = vmax.f32 %v738_v9, 0.0  ;;  %v600_v0 = vmul.f32 %v2205_v47, %v2748_v50 }
 0x1c9   :  { %843 = vmatpush.msra.mxu0 %v760_v33  ;;  %869 = vmatpush.msra.mxu1 %v761_v46  ;;  %v722_v33 = vadd.f32 %v2143_v51, %v605_v22  ;;  %v715_v46 = vadd.f32 %v2163_v42, %v598_v48  ;;  %v793_v40 = vmax.f32 %v730_v56, 0.0  ;;  %v794_v47 = vmax.f32 %v731_v44, 0.0 }
 0x1ca   :  { %895 = vmatpush.msra.mxu2 %v762_v43  ;;  %921 = vmatpush.msra.mxu3 %v763_v12  ;;  %v2751_v43 = vld [vmem:[#allocation31_spill] sm:$0xff]  ;;  %v716_v23 = vadd.f32 %v2163_v42, %v599_v54  ;;  %v708_v2 = vadd.f32 %v2145_v18, %v591_v61  ;;  %v585_v6 = vmul.f32 %v2247_v36, %v2753_v19 }
 0x1cb   :  { %844 = vmatpush.msra.mxu0 %v753_v16  ;;  %870 = vmatpush.msra.mxu1 %v754_v45  ;;  %v593_v12 = vmul.f32 %v2207_v37, %v2751_v43  ;;  %v717_v37 = vadd.f32 %v2163_v42, %v600_v0  ;;  %v709_v16 = vadd.f32 %v2145_v18, %v592_v4  ;;  %v785_v45 = vmax.f32 %v722_v33, 0.0 }
 0x1cc   :  { %896 = vmatpush.msra.mxu2 %v755_v35  ;;  %922 = vmatpush.msra.mxu3 %v756_v13  ;;  %v778_v51 = vmax.f32 %v715_v46, 0.0  ;;  %v584_v35 = vmul.f32 %v2247_v36, %v2752_v41  ;;  %v786_v42 = vmax.f32 %v723_v55, 0.0  ;;  %v787_v13 = vmax.f32 %v724_v63, 0.0 }
 0x1cd   :  { %1258 = vmatmul.msk.f32.vlgmr.msra.gmra.mxu0 %vm819_vm13, %v2306_v30  ;;  %1261 = vmatmul.msk.f32.vlgmr.msra.gmra.mxu1 %vm819_vm13, %v2306_v30  ;;  %v710_v25 = vadd.f32 %v2145_v18, %v593_v12  ;;  %v779_v18 = vmax.f32 %v716_v23, 0.0  ;;  %v578_v31 = vmul.f32 %v2249_v26, %v2756_v5  ;;  %v780_v9 = vmax.f32 %v717_v37, 0.0 }
 0x1ce   :  { %1264 = vmatmul.msk.f32.vlgmr.msra.gmra.mxu2 %vm819_vm13, %v2306_v30  ;;  %1267 = vmatmul.msk.f32.vlgmr.msra.gmra.mxu3 %vm819_vm13, %v2306_v30  ;;  %v701_v38 = vadd.f32 %v2275_v29, %v584_v35  ;;  %v579_v36 = vmul.f32 %v2249_v26, %v2757_v27  ;;  %v771_v56 = vmax.f32 %v708_v2, 0.0 }
 0x1cf   :  { %940 = vmatpush.msrb.mxu0 %v813_v14  ;;  %1279 = vmatpush.msrb.mxu3 %v813_v14  ;;  %v577_v14 = vmul.f32 %v2249_v26, %v2755_v7  ;;  %v773_v44 = vmax.f32 %v710_v25, 0.0  ;;  %v818_v26 = vld [vmem:[%s2634_s1 + $0x10] sm:$0xff] }
 0x1d0   :  { %966 = vmatpush.msrb.mxu1 %v814_v34  ;;  %992 = vmatpush.msrb.mxu2 %v815_v39  ;;  %v702_v34 = vadd.f32 %v2275_v29, %v585_v6  ;;  %v703_v39 = vadd.f32 %v2275_v29, %v586_v60  ;;  %v764_v20 = vmax.f32 %v701_v38, 0.0  ;;  %v695_v29 = vadd.f32 %v2265_v32, %v578_v31 }
 0x1d1   :  { %941 = vmatpush.msrb.mxu0 %v806_v62  ;;  %1280 = vmatpush.msrb.mxu3 %v806_v62  ;;  %v772_v62 = vmax.f32 %v709_v16, 0.0  ;;  %v694_v22 = vadd.f32 %v2265_v32, %v577_v14 }
 0x1d2   :  { %967 = vmatpush.msrb.mxu1 %v807_v1  ;;  %993 = vmatpush.msrb.mxu2 %v808_v24  ;;  %v765_v17 = vmax.f32 %v702_v34, 0.0  ;;  %v766_v48 = vmax.f32 %v703_v39, 0.0  ;;  %v696_v1 = vadd.f32 %v2265_v32, %v579_v36  ;;  %v758_v52 = vmax.f32 %v695_v29, 0.0 }
 0x1d3   :  { %942 = vmatpush.msrb.mxu0 %v799_v15  ;;  %1281 = vmatpush.msrb.mxu3 %v799_v15  ;;  %v757_v24 = vmax.f32 %v694_v22, 0.0 }
 0x1d4   :  { %968 = vmatpush.msrb.mxu1 %v800_v8  ;;  %994 = vmatpush.msrb.mxu2 %v801_v11  ;;  %v759_v21 = vmax.f32 %v696_v1, 0.0 }
 0x1d5   :  { %943 = vmatpush.msrb.mxu0 %v792_v59  ;;  %1282 = vmatpush.msrb.mxu3 %v792_v59 }
 0x1d6   :  { %969 = vmatpush.msrb.mxu1 %v793_v40  ;;  %995 = vmatpush.msrb.mxu2 %v794_v47 }
 0x1d7   :  { %1259 = vmatmul.msk.f32.gmra.mxu0 %vm819_vm13, %v2351_v58  ;;  %1262 = vmatmul.msk.f32.gmra.mxu1 %vm819_vm13, %v2351_v58 }
 0x1d8   :  { %1265 = vmatmul.msk.f32.gmra.mxu2 %vm819_vm13, %v2351_v58  ;;  %1268 = vmatmul.msk.f32.gmra.mxu3 %vm819_vm13, %v2351_v58 }
 0x1d9   :  { %944 = vmatpush.msrb.mxu0 %v785_v45  ;;  %1283 = vmatpush.msrb.mxu3 %v785_v45 }
 0x1da   :  { %970 = vmatpush.msrb.mxu1 %v786_v42  ;;  %996 = vmatpush.msrb.mxu2 %v787_v13 }
 0x1db   :  { %945 = vmatpush.msrb.mxu0 %v778_v51  ;;  %1284 = vmatpush.msrb.mxu3 %v778_v51 }
 0x1dc   :  { %971 = vmatpush.msrb.mxu1 %v779_v18  ;;  %997 = vmatpush.msrb.mxu2 %v780_v9 }
 0x1dd   :  { %946 = vmatpush.msrb.mxu0 %v771_v56  ;;  %1285 = vmatpush.msrb.mxu3 %v771_v56 }
 0x1de   :  { %972 = vmatpush.msrb.mxu1 %v772_v62  ;;  %998 = vmatpush.msrb.mxu2 %v773_v44 }
 0x1df   :  { %947 = vmatpush.msrb.mxu0 %v764_v20  ;;  %1286 = vmatpush.msrb.mxu3 %v764_v20 }
 0x1e0   :  { %973 = vmatpush.msrb.mxu1 %v765_v17  ;;  %999 = vmatpush.msrb.mxu2 %v766_v48 }
 0x1e1   :  { %1260 = vmatmul.msk.f32.gmra.mxu0 %vm819_vm13, %v818_v26  ;;  %1263 = vmatmul.msk.f32.gmra.mxu1 %vm819_vm13, %v818_v26 }
 0x1e2   :  { %1266 = vmatmul.msk.f32.gmra.mxu2 %vm819_vm13, %v818_v26  ;;  %1269 = vmatmul.msk.f32.gmra.mxu3 %vm819_vm13, %v818_v26 }
 0x1e3   :  { %948 = vmatpush.msrb.mxu0 %v757_v24  ;;  %1287 = vmatpush.msrb.mxu3 %v757_v24 }
 0x1e4   :  { %974 = vmatpush.msrb.mxu1 %v758_v52  ;;  %1000 = vmatpush.msrb.mxu2 %v759_v21 }
 0x1e9   :  { %1270 = vmatmul.msk.f32.vlgmr.msrb.gmra.mxu0 %vm819_vm13, %v2306_v30  ;;  %1273 = vmatmul.msk.f32.vlgmr.msrb.gmra.mxu1 %vm819_vm13, %v2306_v30 }
 0x1ea   :  { %1271 = vmatmul.msk.f32.vlgmr.msrb.gmra.mxu3 %vm819_vm13, %v2351_v58  ;;  %1276 = vmatmul.msk.f32.vlgmr.msrb.gmra.mxu2 %vm819_vm13, %v2306_v30 }
 0x1f1   :  { %1274 = vmatmul.msk.f32.gmra.mxu1 %vm819_vm13, %v2351_v58 }
 0x1f2   :  { %1272 = vmatmul.msk.f32.gmra.mxu3 %vm819_vm13, %v818_v26  ;;  %1277 = vmatmul.msk.f32.gmra.mxu2 %vm819_vm13, %v2351_v58 }
 0x1f9   :  { %1275 = vmatmul.msk.f32.gmra.mxu1 %vm819_vm13, %v818_v26 }
 0x1fa   :  { %1278 = vmatmul.msk.f32.gmra.mxu2 %vm819_vm13, %v818_v26 }
 0x24a   :  { %v846_v32 = vpop.f32.mrf.mxu0  ;;  %v872_v53 = vpop.f32.mrf.mxu1 }
 0x24b   :  { %v1011_v0 = vadd.f32 %v872_v53, %v846_v32 }
 0x251   :  { %v898_v10 = vpop.f32.mrf.mxu2  ;;  %v924_v15 = vpop.f32.mrf.mxu3 }
 0x252   :  { %v1012_v28 = vadd.f32 %v1011_v0, %v898_v10 }
 0x254   :  { %v849_v8 = vpop.f32.mrf.mxu0  ;;  %v875_v57 = vpop.f32.mrf.mxu1  ;;  %v1013_v33 = vadd.f32 %v1012_v28, %v924_v15 }
 0x255   :  { %v1020_v46 = vadd.f32 %v875_v57, %v849_v8 }
 0x25b   :  { %v901_v54 = vpop.f32.mrf.mxu2  ;;  %v2408_v30 = vpop.f32.mrf.mxu3 }
 0x25c   :  { %v1021_v12 = vadd.f32 %v1020_v46, %v901_v54 }
 0x25e   :  { %v2410_v11 = vpop.f32.mrf.mxu0  ;;  %v2412_v50 = vpop.f32.mrf.mxu1  ;;  %v1022_v63 = vadd.f32 %v1021_v12, %v2408_v30 }
 0x25f   :  { %v1029_v23 = vadd.f32 %v2412_v50, %v2410_v11 }
 0x265   :  { %v2414_v61 = vpop.f32.mrf.mxu2  ;;  %v2416_v49 = vpop.f32.mrf.mxu3 }
 0x266   :  { %v950_v4 = vpop.f32.mrf.mxu0  ;;  %v976_v59 = vpop.f32.mrf.mxu1  ;;  %v1030_v45 = vadd.f32 %v1029_v23, %v2414_v61 }
 0x267   :  { %v1014_v43 = vadd.f32 %v1013_v33, %v950_v4 }
 0x268   :  { %v1031_v42 = vadd.f32 %v1030_v45, %v2416_v49 }
 0x269   :  { %v1015_v40 = vadd.f32 %v1014_v43, %v976_v59 }
 0x26d   :  { %v953_v47 = vpop.f32.mrf.mxu3  ;;  %v1002_v58 = vpop.f32.mrf.mxu2 }
 0x26e   :  { %v1016_v55 = vsel %vm91_vm0, %v1002_v58, 0.0  ;;  %v979_v2 = vpop.f32.mrf.mxu1  ;;  %v1023_v16 = vadd.f32 %v1022_v63, %v953_v47 }
 0x26f   :  { %v1017_v37 = vadd.f32 %v1016_v55, %v1015_v40 }
 0x270   :  { %v1024_v51 = vadd.f32 %v1023_v16, %v979_v2 }
 0x271   :  { %1018 = vadd.xlane.f32.xlu1 %v1017_v37 }
 0x275   :  { %v1005_v25 = vpop.f32.mrf.mxu2  ;;  %v2423_v41 = vpop.f32.mrf.mxu3 }
 0x276   :  { %v1025_v35 = vsel %vm91_vm0, %v1005_v25, 0.0  ;;  %v1032_v19 = vadd.f32 %v1031_v42, %v2423_v41  ;;  %v2428_v6 = vpop.f32.mrf.mxu1 }
 0x277   :  { %v1026_v13 = vadd.f32 %v1025_v35, %v1024_v51 }
 0x278   :  { %v1033_v3 = vadd.f32 %v1032_v19, %v2428_v6 }
 0x279   :  { %1027 = vadd.xlane.f32.xlu0 %v1026_v13 }
 0x27d   :  { %v1008_v60 = vpop.f32.mrf.mxu2 }
 0x27e   :  { %v1034_v18 = vsel %vm91_vm0, %v1008_v60, 0.0 }
 0x27f   :  { %v1035_v38 = vadd.f32 %v1034_v18, %v1033_v3 }
 0x281   :  { %1036 = vadd.xlane.f32.xlu2 %v1035_v38 }
 0x2e4   :  { %v1019_v7 = vpop.xlane.xlu1 %1018 }
 0x2e5   :  { %v1041_v14 = vmul.f32 0.0012755102, %v1019_v7 }
 0x2e7   :  { %v2432_v5 = vsub.f32 %v846_v32, %v1041_v14  ;;  %v2434_v31 = vsub.f32 %v872_v53, %v1041_v14  ;;  %v2436_v9 = vsub.f32 %v898_v10, %v1041_v14  ;;  %v2438_v34 = vsub.f32 %v924_v15, %v1041_v14 }
 0x2e8   :  { %v2444_v36 = vsub.f32 %v950_v4, %v1041_v14  ;;  %v2448_v20 = vsub.f32 %v976_v59, %v1041_v14  ;;  %v2450_v22 = vsub.f32 %v1002_v58, %v1041_v14 }
 0x2e9   :  { %v1065_v39 = vmul.f32 %v2432_v5, %v2432_v5  ;;  %v1066_v27 = vmul.f32 %v2434_v31, %v2434_v31  ;;  %v1067_v56 = vmul.f32 %v2436_v9, %v2436_v9  ;;  %v1068_v48 = vmul.f32 %v2438_v34, %v2438_v34 }
 0x2ea   :  { %v1069_v29 = vmul.f32 %v2444_v36, %v2444_v36  ;;  %v1070_v32 = vmul.f32 %v2448_v20, %v2448_v20  ;;  %v1071_v53 = vmul.f32 %v2450_v22, %v2450_v22 }
 0x2eb   :  { %v1086_v62 = vadd.f32 %v1066_v27, %v1065_v39 }
 0x2ec   :  { %v1028_v44 = vpop.xlane.xlu0 %1027  ;;  %v1091_v33 = vsel %vm91_vm0, %v1071_v53, 0.0 }
 0x2ed   :  { %v1042_v17 = vmul.f32 0.0012755102, %v1028_v44  ;;  %v1087_v26 = vadd.f32 %v1086_v62, %v1067_v56 }
 0x2ef   :  { %v1088_v1 = vadd.f32 %v1087_v26, %v1068_v48  ;;  %v2456_v24 = vsub.f32 %v849_v8, %v1042_v17  ;;  %v2458_v52 = vsub.f32 %v875_v57, %v1042_v17  ;;  %v2460_v21 = vsub.f32 %v901_v54, %v1042_v17 }
 0x2f0   :  { %v2467_v15 = vsub.f32 %v2408_v30, %v1042_v17  ;;  %v2473_v57 = vsub.f32 %v953_v47, %v1042_v17  ;;  %v2478_v46 = vsub.f32 %v979_v2, %v1042_v17  ;;  %v2480_v30 = vsub.f32 %v1005_v25, %v1042_v17 }
 0x2f1   :  { %v1089_v10 = vadd.f32 %v1088_v1, %v1069_v29  ;;  %v1072_v0 = vmul.f32 %v2456_v24, %v2456_v24  ;;  %v1073_v8 = vmul.f32 %v2458_v52, %v2458_v52  ;;  %v1074_v28 = vmul.f32 %v2460_v21, %v2460_v21 }
 0x2f2   :  { %v1075_v40 = vmul.f32 %v2467_v15, %v2467_v15  ;;  %v1076_v47 = vmul.f32 %v2473_v57, %v2473_v57  ;;  %v1077_v2 = vmul.f32 %v2478_v46, %v2478_v46  ;;  %v1078_v16 = vmul.f32 %v2480_v30, %v2480_v30 }
 0x2f3   :  { %v1090_v54 = vadd.f32 %v1089_v10, %v1070_v32  ;;  %v1095_v4 = vadd.f32 %v1073_v8, %v1072_v0 }
 0x2f4   :  { %v1037_v59 = vpop.xlane.xlu2 %1036  ;;  %v1100_v13 = vsel %vm91_vm0, %v1078_v16, 0.0 }
 0x2f5   :  { %v1043_v43 = vmul.f32 0.0012755102, %v1037_v59  ;;  %v1092_v12 = vadd.f32 %v1091_v33, %v1090_v54  ;;  %v1096_v58 = vadd.f32 %v1095_v4, %v1074_v28  ;;  %v1119_v33 = vld [vmem:[%s2635_s4] sm:$0xff] }
 0x2f7   :  { %1093 = vadd.xlane.f32.xlu1 %v1092_v12  ;;  %v1097_v55 = vadd.f32 %v1096_v58, %v1075_v40  ;;  %v2487_v63 = vsub.f32 %v2410_v11, %v1043_v43  ;;  %v2490_v23 = vsub.f32 %v2412_v50, %v1043_v43  ;;  %v2493_v37 = vsub.f32 %v2414_v61, %v1043_v43 }
 0x2f8   :  { %v2500_v51 = vsub.f32 %v2416_v49, %v1043_v43  ;;  %v2507_v61 = vsub.f32 %v2423_v41, %v1043_v43  ;;  %v2512_v19 = vsub.f32 %v1008_v60, %v1043_v43  ;;  %v2515_v3 = vsub.f32 %v2428_v6, %v1043_v43 }
 0x2f9   :  { %v1098_v45 = vadd.f32 %v1097_v55, %v1076_v47  ;;  %v1079_v11 = vmul.f32 %v2487_v63, %v2487_v63  ;;  %v1080_v50 = vmul.f32 %v2490_v23, %v2490_v23  ;;  %v1081_v35 = vmul.f32 %v2493_v37, %v2493_v37 }
 0x2fa   :  { %v1082_v18 = vmul.f32 %v2500_v51, %v2500_v51  ;;  %v1083_v41 = vmul.f32 %v2507_v61, %v2507_v61  ;;  %v1085_v14 = vmul.f32 %v2512_v19, %v2512_v19  ;;  %v1084_v60 = vmul.f32 %v2515_v3, %v2515_v3 }
 0x2fb   :  { %v1099_v25 = vadd.f32 %v1098_v45, %v1077_v2  ;;  %v1104_v42 = vadd.f32 %v1080_v50, %v1079_v11  ;;  %v1120_v45 = vld [vmem:[%s2635_s4 + $0x8] sm:$0xff] }
 0x2fc   :  { %v1109_v6 = vsel %vm91_vm0, %v1085_v14, 0.0 }
 0x2fd   :  { %v1101_v49 = vadd.f32 %v1100_v13, %v1099_v25  ;;  %v1105_v38 = vadd.f32 %v1104_v42, %v1081_v35  ;;  %v1194_v35 = vld [vmem:[%s2636_s5] sm:$0xff] }
 0x2ff   :  { %1102 = vadd.xlane.f32.xlu2 %v1101_v49  ;;  %v1106_v7 = vadd.f32 %v1105_v38, %v1082_v18  ;;  %v1121_v18 = vld [vmem:[%s2635_s4 + $0x10] sm:$0xff] }
 0x301   :  { %v1107_v39 = vadd.f32 %v1106_v7, %v1083_v41  ;;  %v1196_v7 = vld [vmem:[%s2636_s5 + $0x10] sm:$0xff] }
 0x303   :  { %v1108_v27 = vadd.f32 %v1107_v39, %v1084_v60  ;;  %v1195_v60 = vld [vmem:[%s2636_s5 + $0x8] sm:$0xff] }
 0x305   :  { %v1110_v56 = vadd.f32 %v1109_v6, %v1108_v27 }
 0x307   :  { %1111 = vadd.xlane.f32.xlu0 %v1110_v56 }
 0x36a   :  { %v1094_v62 = vpop.xlane.xlu1 %1093 }
 0x36b   :  { %v1116_v44 = vmul.f32 0.0012755102, %v1094_v62 }
 0x36d   :  { %v1122_v17 = vadd.f32 1e-05, %v1116_v44 }
 0x36f   :  { %1310 = vrsqrt.f32 %v1122_v17  ;;  %vm1131_vm15 = vweird.f32 %v1122_v17 }
 0x372   :  { %v1103_v48 = vpop.xlane.xlu2 %1102 }
 0x373   :  { %v1117_v26 = vmul.f32 0.0012755102, %v1103_v48 }
 0x375   :  { %v1311_v29 = vpop.eup %1310  ;;  %v1123_v1 = vadd.f32 1e-05, %v1117_v26 }
 0x376   :  { %v1126_v32 = vmul.f32 %v1311_v29, %v1122_v17  ;;  %vm1132_vm14 = vweird.f32 %v1311_v29 }
 0x377   :  { %1312 = vrsqrt.f32 %v1123_v1  ;;  %vm1133_vm1 = vmor %vm1131_vm15, %vm1132_vm14  ;;  %vm1141_vm3 = vweird.f32 %v1123_v1 }
 0x378   :  { %v1127_v53 = vmul.f32 %v1311_v29, %v1126_v32 }
 0x37a   :  { %v1128_v10 = vmul.f32 0.5, %v1127_v53  ;;  %v1112_v0 = vpop.xlane.xlu0 %1111 }
 0x37b   :  { %v1118_v8 = vmul.f32 0.0012755102, %v1112_v0 }
 0x37c   :  { %v1129_v54 = vsub.f32 1.5, %v1128_v10 }
 0x37d   :  { %v1313_v28 = vpop.eup %1312  ;;  %v1124_v4 = vadd.f32 1e-05, %v1118_v8 }
 0x37e   :  { %v1136_v59 = vmul.f32 %v1313_v28, %v1123_v1  ;;  %v1130_v43 = vmul.f32 %v1311_v29, %v1129_v54  ;;  %vm1142_vm2 = vweird.f32 %v1313_v28 }
 0x37f   :  { %1314 = vrsqrt.f32 %v1124_v4  ;;  %vm1143_vm4 = vmor %vm1141_vm3, %vm1142_vm2  ;;  %vm1151_vm6 = vweird.f32 %v1124_v4 }
 0x380   :  { %v1137_v12 = vmul.f32 %v1313_v28, %v1136_v59  ;;  %v1134_v40 = vsel %vm1133_vm1, %v1311_v29, %v1130_v43 }
 0x381   :  { %v1155_v58 = vmul.f32 %v1134_v40, %v1119_v33 }
 0x382   :  { %v1138_v47 = vmul.f32 0.5, %v1137_v12 }
 0x383   :  { %1160 = vperm.xlu1 %1290, %v1155_v58  }
 0x384   :  { %v1139_v55 = vsub.f32 1.5, %v1138_v47 }
 0x385   :  { %v1315_v2 = vpop.eup %1314 }
 0x386   :  { %v1146_v16 = vmul.f32 %v1315_v2, %v1124_v4  ;;  %v1140_v11 = vmul.f32 %v1313_v28, %v1139_v55  ;;  %vm1152_vm5 = vweird.f32 %v1315_v2 }
 0x387   :  { %vm1153_vm7 = vmor %vm1151_vm6, %vm1152_vm5 }
 0x388   :  { %v1147_v50 = vmul.f32 %v1315_v2, %v1146_v16  ;;  %v1144_v25 = vsel %vm1143_vm4, %v1313_v28, %v1140_v11 }
 0x389   :  { %v1156_v42 = vmul.f32 %v1144_v25, %v1120_v45 }
 0x38a   :  { %v1148_v13 = vmul.f32 0.5, %v1147_v50 }
 0x38b   :  { %1165 = vperm.xlu2 %1289, %v1156_v42   ;;  %1199 = vperm.xlu1 %1290, %v1194_v35  }
 0x38c   :  { %v1149_v49 = vsub.f32 1.5, %v1148_v13 }
 0x38e   :  { %v1150_v38 = vmul.f32 %v1315_v2, %v1149_v49 }
 0x390   :  { %v1154_v41 = vsel %vm1153_vm7, %v1315_v2, %v1150_v38 }
 0x391   :  { %v1157_v14 = vmul.f32 %v1154_v41, %v1121_v18 }
 0x393   :  { %1170 = vperm.xlu0 %1291, %v1157_v14   ;;  %1209 = vperm.xlu2 %1289, %v1196_v7  }
 0x39b   :  { %1204 = vperm.xlu0 %1291, %v1195_v60  }
 0x3e5   :  { %v1166_v62 = vpop.permute.xlu2 %1165 }
 0x3e6   :  { %v1186_v2 = vmul.f32 %v1166_v62, %v2480_v30 }
 0x3ed   :  { %v1210_v8 = vpop.permute.xlu2 %1209 }
 0x3f5   :  { %v1161_v39 = vpop.permute.xlu1 %1160 }
 0x3f6   :  { %v1173_v27 = vmul.f32 %v1161_v39, %v2432_v5  ;;  %v1174_v6 = vmul.f32 %v1161_v39, %v2434_v31  ;;  %v1175_v56 = vmul.f32 %v1161_v39, %v2436_v9  ;;  %v1176_v44 = vmul.f32 %v1161_v39, %v2438_v34 }
 0x3f7   :  { %v1177_v48 = vmul.f32 %v1161_v39, %v2444_v36  ;;  %v1178_v32 = vmul.f32 %v1161_v39, %v2448_v20  ;;  %v1179_v10 = vmul.f32 %v1161_v39, %v2450_v22 }
 0x3fd   :  { %v1200_v17 = vpop.permute.xlu1 %1199 }
 0x3fe   :  { %v1212_v26 = vadd.f32 %v1200_v17, %v1173_v27  ;;  %v1213_v29 = vadd.f32 %v1200_v17, %v1174_v6  ;;  %v1214_v1 = vadd.f32 %v1200_v17, %v1175_v56  ;;  %v1215_v53 = vadd.f32 %v1200_v17, %v1176_v44 }
 0x3ff   :  { %v1216_v0 = vadd.f32 %v1200_v17, %v1177_v48  ;;  %v1217_v5 = vadd.f32 %v1200_v17, %v1178_v32  ;;  %v1218_v31 = vadd.f32 %v1200_v17, %v1179_v10 }
 0x400   :  { %1233 = vst [vmem:[%s2637_s6] sm:$0xff] %v1212_v26 }
 0x401   :  { %1234 = vst [vmem:[%s2637_s6 + $0x8] sm:$0xff] %v1213_v29 }
 0x402   :  { %1235 = vst [vmem:[%s2637_s6 + $0x10] sm:$0xff] %v1214_v1 }
 0x403   :  { %1236 = vst [vmem:[%s2637_s6 + $0x18] sm:$0xff] %v1215_v53 }
 0x404   :  { %1237 = vst [vmem:[%s2637_s6 + $0x20] sm:$0xff] %v1216_v0 }
 0x405   :  { %1238 = vst [vmem:[%s2637_s6 + $0x28] sm:$0xff] %v1217_v5  ;;  %v1171_v9 = vpop.permute.xlu0 %1170 }
 0x406   :  { %1239 = vst.msk [vmem:[%s2637_s6 + $0x30] sm:$0xff] %vm91_vm0, %v1218_v31  ;;  %v1187_v34 = vmul.f32 %v1171_v9, %v2487_v63  ;;  %v1188_v36 = vmul.f32 %v1171_v9, %v2490_v23  ;;  %v1189_v20 = vmul.f32 %v1171_v9, %v2493_v37  ;;  %v1190_v22 = vmul.f32 %v1171_v9, %v2500_v51 }
 0x407   :  { %v1191_v54 = vmul.f32 %v1171_v9, %v2507_v61  ;;  %v1192_v28 = vmul.f32 %v1171_v9, %v2515_v3  ;;  %v1193_v4 = vmul.f32 %v1171_v9, %v2512_v19  ;;  %v1180_v37 = vmul.f32 %v1166_v62, %v2456_v24 }
 0x408   :  { %v1226_v59 = vadd.f32 %v1210_v8, %v1187_v34  ;;  %v1227_v33 = vadd.f32 %v1210_v8, %v1188_v36  ;;  %v1228_v43 = vadd.f32 %v1210_v8, %v1189_v20  ;;  %v1229_v12 = vadd.f32 %v1210_v8, %v1190_v22 }
 0x409   :  { %v1230_v40 = vadd.f32 %v1210_v8, %v1191_v54  ;;  %v1231_v63 = vadd.f32 %v1210_v8, %v1192_v28  ;;  %v1232_v23 = vadd.f32 %v1210_v8, %v1193_v4  ;;  %v1181_v51 = vmul.f32 %v1166_v62, %v2458_v52 }
 0x40a   :  { %1247 = vst [vmem:[%s2637_s6 + $0x70] sm:$0xff] %v1226_v59  ;;  %v1182_v19 = vmul.f32 %v1166_v62, %v2460_v21  ;;  %v1183_v3 = vmul.f32 %v1166_v62, %v2467_v15  ;;  %v1184_v24 = vmul.f32 %v1166_v62, %v2473_v57  ;;  %v1185_v21 = vmul.f32 %v1166_v62, %v2478_v46 }
 0x40b   :  { %1248 = vst [vmem:[%s2637_s6 + $0x78] sm:$0xff] %v1227_v33 }
 0x40c   :  { %1249 = vst [vmem:[%s2637_s6 + $0x80] sm:$0xff] %v1228_v43 }
 0x40d   :  { %1250 = vst [vmem:[%s2637_s6 + $0x88] sm:$0xff] %v1229_v12  ;;  %v1205_v61 = vpop.permute.xlu0 %1204 }
 0x40e   :  { %1251 = vst [vmem:[%s2637_s6 + $0x90] sm:$0xff] %v1230_v40  ;;  %v1219_v58 = vadd.f32 %v1205_v61, %v1180_v37  ;;  %v1220_v47 = vadd.f32 %v1205_v61, %v1181_v51  ;;  %v1221_v52 = vadd.f32 %v1205_v61, %v1182_v19  ;;  %v1222_v55 = vadd.f32 %v1205_v61, %v1183_v3 }
 0x40f   :  { %1252 = vst [vmem:[%s2637_s6 + $0x98] sm:$0xff] %v1231_v63  ;;  %v1223_v15 = vadd.f32 %v1205_v61, %v1184_v24  ;;  %v1224_v16 = vadd.f32 %v1205_v61, %v1185_v21  ;;  %v1225_v57 = vadd.f32 %v1205_v61, %v1186_v2 }
 0x410   :  { %1253 = vst.msk [vmem:[%s2637_s6 + $0xa0] sm:$0xff] %vm91_vm0, %v1232_v23 }
 0x411   :  { %1240 = vst [vmem:[%s2637_s6 + $0x38] sm:$0xff] %v1219_v58 }
 0x412   :  { %1241 = vst [vmem:[%s2637_s6 + $0x40] sm:$0xff] %v1220_v47 }
 0x413   :  { %1242 = vst [vmem:[%s2637_s6 + $0x48] sm:$0xff] %v1221_v52 }
 0x414   :  { %1243 = vst [vmem:[%s2637_s6 + $0x50] sm:$0xff] %v1222_v55 }
 0x415   :  { %1244 = vst [vmem:[%s2637_s6 + $0x58] sm:$0xff] %v1223_v15 }
 0x416   :  { %1245 = vst [vmem:[%s2637_s6 + $0x60] sm:$0xff] %v1224_v16 }
 0x417   :  { %1246 = vst.msk [vmem:[%s2637_s6 + $0x68] sm:$0xff] %vm91_vm0, %v1225_v57 }

</bundles_post_ra>
